<compile_context>
chip_gen: v7x
topology: tpu7x:2x2x1
jax: 0.10.0
libtpu: 0.0.40
codegen_flags: <defaults>
</compile_context>

<pallas_src>
import jax
import jax.numpy as jnp
from jax.experimental import pallas as pl
from jax.experimental.pallas import tpu as pltpu

HIDDEN1 = 1024
HIDDEN2 = 512


def _round_up(n, m):
    return ((n + m - 1) // m) * m


# ---------------------------------------------------------------------------
# Kernel body: fused 3-layer MLP, bf16 MXU inputs, f32 accumulation.
# ---------------------------------------------------------------------------
def expert_kernel(x_ref, w1_ref, b1_ref, w2_ref, b2_ref, w3_ref, b3_ref, o_ref):
    h1 = jnp.dot(x_ref[...], w1_ref[...], preferred_element_type=jnp.float32)
    h1 = jnp.maximum(h1 + b1_ref[...], 0.0).astype(jnp.bfloat16)   # dropout == identity (eval)

    h2 = jnp.dot(h1, w2_ref[...], preferred_element_type=jnp.float32)
    h2 = jnp.maximum(h2 + b2_ref[...], 0.0).astype(jnp.bfloat16)   # dropout == identity (eval)

    out = jnp.dot(h2, w3_ref[...], preferred_element_type=jnp.float32) + b3_ref[...]
    o_ref[...] = out.astype(o_ref.dtype)


# ---------------------------------------------------------------------------
# One-time weight preparation (hoisted out of the per-call hot path).
# ---------------------------------------------------------------------------
def prepare_params(params):
    """Cast weights to bf16 and pad to lane-dense shapes ONCE; cache the result."""
    input_dim = params["w1"].shape[0]
    output_dim = params["w3"].shape[1]
    in_pad = _round_up(input_dim, 128)
    out_pad = _round_up(output_dim, 128)

    w1 = params["w1"].astype(jnp.bfloat16)
    if in_pad != input_dim:
        w1 = jnp.pad(w1, ((0, in_pad - input_dim), (0, 0)))          # zero K-pad: exact
    w2 = params["w2"].astype(jnp.bfloat16)
    w3 = params["w3"].astype(jnp.bfloat16)

    b1 = params["b1"].astype(jnp.float32).reshape(1, HIDDEN1)
    b2 = params["b2"].astype(jnp.float32).reshape(1, HIDDEN2)
    b3 = params["b3"].astype(jnp.float32).reshape(1, output_dim)
    if out_pad != output_dim:
        w3 = jnp.pad(w3, ((0, 0), (0, out_pad - output_dim)))
        b3 = jnp.pad(b3, ((0, 0), (0, out_pad - output_dim)))

    return {
        "w1": w1, "b1": b1, "w2": w2, "b2": b2, "w3": w3, "b3": b3,
        "input_dim": input_dim, "output_dim": output_dim,
        "in_pad": in_pad, "out_pad": out_pad,
    }


def _resident_spec(shape):
    """BlockSpec for a grid-invariant operand: single VMEM buffer (no re-DMA)."""
    index_map = lambda i: (0,) * len(shape)
    if hasattr(pl, "Buffered"):
        try:
            return pl.BlockSpec(shape, index_map, pipeline_mode=pl.Buffered(1))
        except TypeError:
            pass
    return pl.BlockSpec(shape, index_map)


def _vmem_cap_bytes():
    """~85% of this generation's physical VMEM (fallback: 64 MiB if unknown)."""
    try:
        phys = pltpu.get_tpu_info().vmem_capacity_bytes
    except Exception:
        phys = 64 << 20
    return int(phys * 0.85)


# ---------------------------------------------------------------------------
# Forward wrapper (hot path): only activations are touched per call.
# ---------------------------------------------------------------------------
def expert_forward(x, prepped, *, batch_tile=256):
    """x: (B, input_dim) float32. prepped: output of prepare_params()."""
    B, input_dim = x.shape
    assert input_dim == prepped["input_dim"]
    in_pad = prepped["in_pad"]
    out_pad = prepped["out_pad"]
    output_dim = prepped["output_dim"]
    w1, b1 = prepped["w1"], prepped["b1"]
    w2, b2 = prepped["w2"], prepped["b2"]
    w3, b3 = prepped["w3"], prepped["b3"]

    # --- batch tile: multiple of 16 (bf16 sublanes); >=2 grid steps when B
    #     allows so the "parallel" axis shards across v7x's 2 TensorCores. ----
    bt = min(batch_tile, _round_up(max(1, -(-B // 2)), 16))
    bt = max(16, bt)
    Bp = _round_up(B, bt)
    grid = (Bp // bt,)

    # --- activations: cast + pad (batch rows and K lanes) ---------------------
    x_b = x.astype(jnp.bfloat16)
    pad_rows = Bp - B
    pad_cols = in_pad - input_dim
    if pad_rows or pad_cols:
        x_b = jnp.pad(x_b, ((0, pad_rows), (0, pad_cols)))

    # --- advisory cost estimate ----------------------------------------------
    flops = 2 * Bp * (in_pad * HIDDEN1 + HIDDEN1 * HIDDEN2 + HIDDEN2 * out_pad)
    bytes_accessed = (
        x_b.size * 2
        + (w1.size + w2.size + w3.size) * 2
        + (b1.size + b2.size + b3.size) * 4
        + Bp * out_pad * 4
    )
    cost = pl.CostEstimate(flops=flops, transcendentals=0, bytes_accessed=bytes_accessed)

    # --- VMEM budget: single-buffered weights, double-buffered x/out tiles,
    #     plus f32 h1/h2 live-intermediate headroom. ---------------------------
    vmem = (
        (w1.size + w2.size + w3.size) * 2        # bf16 weights, Buffered(1)
        + (b1.size + b2.size + b3.size) * 4      # f32 biases, Buffered(1)
        + 2 * bt * in_pad * 2                    # x tile (bf16), double-buffered
        + 2 * bt * out_pad * 4                   # out tile (f32), double-buffered
        + 2 * bt * (HIDDEN1 + HIDDEN2) * 4       # h1/h2 f32 intermediates / spill
    )
    vmem_limit = min(_round_up(vmem + (8 << 20), 1 << 20), _vmem_cap_bytes())

    out_padded = pl.pallas_call(
        expert_kernel,
        out_shape=jax.ShapeDtypeStruct((Bp, out_pad), jnp.float32),
        grid_spec=pltpu.PrefetchScalarGridSpec(
            num_scalar_prefetch=0,
            grid=grid,
            in_specs=[
                # activations: tiled over the batch axis
                pl.BlockSpec((bt, in_pad), lambda i: (i, 0)),
                # weights / biases: grid-invariant, single-buffered residents
                _resident_spec((in_pad, HIDDEN1)),
                _resident_spec((1, HIDDEN1)),
                _resident_spec((HIDDEN1, HIDDEN2)),
                _resident_spec((1, HIDDEN2)),
                _resident_spec((HIDDEN2, out_pad)),
                _resident_spec((1, out_pad)),
            ],
            out_specs=pl.BlockSpec((bt, out_pad), lambda i: (i, 0)),
        ),
        compiler_params=pltpu.CompilerParams(
            dimension_semantics=("parallel",),
            vmem_limit_bytes=vmem_limit,
        ),
        cost_estimate=cost,
    )(x_b, w1, b1, w2, b2, w3, b3)

    # strip batch and lane padding
    return out_padded[:B, :output_dim]


# ---------------------------------------------------------------------------
# Parameter init (PyTorch nn.Linear default) and pure-JAX reference.
# ---------------------------------------------------------------------------
def init_params(key, input_dim, output_dim):
    ks = jax.random.split(key, 6)

    def linear(kw, kb, fan_in, fan_out):
        bound = 1.0 / jnp.sqrt(fan_in)
        w = jax.random.uniform(kw, (fan_in, fan_out), jnp.float32, -bound, bound)
        b = jax.random.uniform(kb, (1, fan_out), jnp.float32, -bound, bound)
        return w, b

    w1, b1 = linear(ks[0], ks[1], input_dim, HIDDEN1)
    w2, b2 = linear(ks[2], ks[3], HIDDEN1, HIDDEN2)
    w3, b3 = linear(ks[4], ks[5], HIDDEN2, output_dim)
    return {"w1": w1, "b1": b1, "w2": w2, "b2": b2, "w3": w3, "b3": b3}


def reference_forward(x, p):
    h1 = jnp.maximum(x @ p["w1"] + p["b1"], 0.0)
    h2 = jnp.maximum(h1 @ p["w2"] + p["b2"], 0.0)
    return h2 @ p["w3"] + p["b3"]


if __name__ == "__main__":
    key = jax.random.PRNGKey(0)
    k_x, k_p, k_x2 = jax.random.split(key, 3)

    input_dim, output_dim = 32, 16
    params = init_params(k_p, input_dim, output_dim)
    prepped = prepare_params(params)  # one-time weight cast/pad, reused across calls

    # Test 1: small batch, single grid step.
    batch = 16
    x = jax.random.normal(k_x, (batch, input_dim), jnp.float32)
    out = jax.block_until_ready(expert_forward(x, prepped))
    ref = reference_forward(x, params)
    assert out.shape == (batch, output_dim)
    # bf16 matmul inputs with f32 accumulation -> looser tolerance than pure f32.
    assert jnp.allclose(out, ref, atol=2e-2, rtol=2e-2), "mismatch vs reference (test 1)"

    # Test 2: batch not divisible by the tile -> padding + multi-step grid.
    batch2 = 20
    x2 = jax.random.normal(k_x2, (batch2, input_dim), jnp.float32)
    out2 = jax.block_until_ready(expert_forward(x2, prepped))
    ref2 = reference_forward(x2, params)
    assert out2.shape == (batch2, output_dim)
    assert jnp.allclose(out2, ref2, atol=2e-2, rtol=2e-2), "mismatch vs reference (test 2)"

    print("KERNEL_OK")
</pallas_src>

<mosaic_0001>
module attributes {stable_mosaic.version = 11 : i64} {
  func.func @expert_kernel(%arg0: i32, %arg1: memref<16x128xbf16, #tpu.memory_space<vmem>>, %arg2: memref<128x1024xbf16, #tpu.memory_space<vmem>>, %arg3: memref<1x1024xf32, #tpu.memory_space<vmem>>, %arg4: memref<1024x512xbf16, #tpu.memory_space<vmem>>, %arg5: memref<1x512xf32, #tpu.memory_space<vmem>>, %arg6: memref<512x128xbf16, #tpu.memory_space<vmem>>, %arg7: memref<1x128xf32, #tpu.memory_space<vmem>>, %arg8: memref<16x128xf32, #tpu.memory_space<vmem>>) attributes {dimension_semantics = [#tpu.dimension_semantics<parallel>], iteration_bounds = array<i64: 1>, scalar_prefetch = 0 : i64, scratch_operands = 0 : i64, tpu.core_type = #tpu.core_type<tc>, window_params = [{transform_indices = @transform_0, window_bounds = array<i64: 16, 128>}, {pipeline_mode = #tpu.pipeline_mode<synchronous>, transform_indices = @transform_1, window_bounds = array<i64: 128, 1024>}, {pipeline_mode = #tpu.pipeline_mode<synchronous>, transform_indices = @transform_2, window_bounds = array<i64: 1, 1024>}, {pipeline_mode = #tpu.pipeline_mode<synchronous>, transform_indices = @transform_3, window_bounds = array<i64: 1024, 512>}, {pipeline_mode = #tpu.pipeline_mode<synchronous>, transform_indices = @transform_4, window_bounds = array<i64: 1, 512>}, {pipeline_mode = #tpu.pipeline_mode<synchronous>, transform_indices = @transform_5, window_bounds = array<i64: 512, 128>}, {pipeline_mode = #tpu.pipeline_mode<synchronous>, transform_indices = @transform_6, window_bounds = array<i64: 1, 128>}, {transform_indices = @transform_7, window_bounds = array<i64: 16, 128>}]} {
    %c0 = arith.constant 0 : index
    %c0_0 = arith.constant 0 : index
    %0 = vector.load %arg1[%c0, %c0_0] : memref<16x128xbf16, #tpu.memory_space<vmem>>, vector<16x128xbf16>
    %c0_1 = arith.constant 0 : index
    %c0_2 = arith.constant 0 : index
    %1 = vector.load %arg2[%c0_1, %c0_2] : memref<128x1024xbf16, #tpu.memory_space<vmem>>, vector<128x1024xbf16>
    %cst = arith.constant dense<0.000000e+00> : vector<16x1024xf32>
    %2 = tpu.matmul %0, %1, %cst {dimension_numbers = #tpu.dot_dimension_numbers<[1], [0], [0], [1], [0, 0, 1, 1], [], []>} : vector<16x128xbf16>, vector<128x1024xbf16>, vector<16x1024xf32> -> vector<16x1024xf32>
    %c0_3 = arith.constant 0 : index
    %c0_4 = arith.constant 0 : index
    %3 = vector.load %arg3[%c0_3, %c0_4] : memref<1x1024xf32, #tpu.memory_space<vmem>>, vector<1x1024xf32>
    %4 = vector.broadcast %3 : vector<1x1024xf32> to vector<16x1024xf32>
    %5 = arith.addf %2, %4 : vector<16x1024xf32>
    %cst_5 = arith.constant 0.000000e+00 : f32
    %6 = vector.broadcast %cst_5 : f32 to vector<16x1024xf32>
    %7 = arith.maximumf %5, %6 : vector<16x1024xf32>
    %8 = arith.truncf %7 : vector<16x1024xf32> to vector<16x1024xbf16>
    %c0_6 = arith.constant 0 : index
    %c0_7 = arith.constant 0 : index
    %9 = vector.load %arg4[%c0_6, %c0_7] : memref<1024x512xbf16, #tpu.memory_space<vmem>>, vector<1024x512xbf16>
    %cst_8 = arith.constant dense<0.000000e+00> : vector<16x512xf32>
    %10 = tpu.matmul %8, %9, %cst_8 {dimension_numbers = #tpu.dot_dimension_numbers<[1], [0], [0], [1], [0, 0, 1, 1], [], []>} : vector<16x1024xbf16>, vector<1024x512xbf16>, vector<16x512xf32> -> vector<16x512xf32>
    %c0_9 = arith.constant 0 : index
    %c0_10 = arith.constant 0 : index
    %11 = vector.load %arg5[%c0_9, %c0_10] : memref<1x512xf32, #tpu.memory_space<vmem>>, vector<1x512xf32>
    %12 = vector.broadcast %11 : vector<1x512xf32> to vector<16x512xf32>
    %13 = arith.addf %10, %12 : vector<16x512xf32>
    %cst_11 = arith.constant 0.000000e+00 : f32
    %14 = vector.broadcast %cst_11 : f32 to vector<16x512xf32>
    %15 = arith.maximumf %13, %14 : vector<16x512xf32>
    %16 = arith.truncf %15 : vector<16x512xf32> to vector<16x512xbf16>
    %c0_12 = arith.constant 0 : index
    %c0_13 = arith.constant 0 : index
    %17 = vector.load %arg6[%c0_12, %c0_13] : memref<512x128xbf16, #tpu.memory_space<vmem>>, vector<512x128xbf16>
    %cst_14 = arith.constant dense<0.000000e+00> : vector<16x128xf32>
    %18 = tpu.matmul %16, %17, %cst_14 {dimension_numbers = #tpu.dot_dimension_numbers<[1], [0], [0], [1], [0, 0, 1, 1], [], []>} : vector<16x512xbf16>, vector<512x128xbf16>, vector<16x128xf32> -> vector<16x128xf32>
    %c0_15 = arith.constant 0 : index
    %c0_16 = arith.constant 0 : index
    %19 = vector.load %arg7[%c0_15, %c0_16] : memref<1x128xf32, #tpu.memory_space<vmem>>, vector<1x128xf32>
    %20 = vector.broadcast %19 : vector<1x128xf32> to vector<16x128xf32>
    %21 = arith.addf %18, %20 : vector<16x128xf32>
    %c0_17 = arith.constant 0 : index
    %c0_18 = arith.constant 0 : index
    %22 = vector.load %arg8[%c0_17, %c0_18] : memref<16x128xf32, #tpu.memory_space<vmem>>, vector<16x128xf32>
    tpu.vector_store %arg8[%c0_17, %c0_18], %21 {strides = array<i32>} : memref<16x128xf32, #tpu.memory_space<vmem>>, vector<16x128xf32>,
    return
  }
  func.func @transform_0(%arg0: i32) -> (i32, i32) {
    %c0_i32 = arith.constant 0 : i32
    %c0_i32_0 = arith.constant 0 : i32
    return %arg0, %c0_i32 : i32, i32
  }
  func.func @transform_1(%arg0: i32) -> (i32, i32) {
    %c0_i32 = arith.constant 0 : i32
    %c0_i32_0 = arith.constant 0 : i32
    %c0_i32_1 = arith.constant 0 : i32
    return %c0_i32, %c0_i32_0 : i32, i32
  }
  func.func @transform_2(%arg0: i32) -> (i32, i32) {
    %c0_i32 = arith.constant 0 : i32
    %c0_i32_0 = arith.constant 0 : i32
    %c0_i32_1 = arith.constant 0 : i32
    return %c0_i32, %c0_i32_0 : i32, i32
  }
  func.func @transform_3(%arg0: i32) -> (i32, i32) {
    %c0_i32 = arith.constant 0 : i32
    %c0_i32_0 = arith.constant 0 : i32
    %c0_i32_1 = arith.constant 0 : i32
    return %c0_i32, %c0_i32_0 : i32, i32
  }
  func.func @transform_4(%arg0: i32) -> (i32, i32) {
    %c0_i32 = arith.constant 0 : i32
    %c0_i32_0 = arith.constant 0 : i32
    %c0_i32_1 = arith.constant 0 : i32
    return %c0_i32, %c0_i32_0 : i32, i32
  }
  func.func @transform_5(%arg0: i32) -> (i32, i32) {
    %c0_i32 = arith.constant 0 : i32
    %c0_i32_0 = arith.constant 0 : i32
    %c0_i32_1 = arith.constant 0 : i32
    return %c0_i32, %c0_i32_0 : i32, i32
  }
  func.func @transform_6(%arg0: i32) -> (i32, i32) {
    %c0_i32 = arith.constant 0 : i32
    %c0_i32_0 = arith.constant 0 : i32
    %c0_i32_1 = arith.constant 0 : i32
    return %c0_i32, %c0_i32_0 : i32, i32
  }
  func.func @transform_7(%arg0: i32) -> (i32, i32) {
    %c0_i32 = arith.constant 0 : i32
    %c0_i32_0 = arith.constant 0 : i32
    return %arg0, %c0_i32 : i32, i32
  }
}

</mosaic_0001>

<bundles_post_ra>
// kernel: tpu_custom_call.1
= control target key start
LH: loop header
LB: loop body
LE: loop exit
PB: predicated region body
PF: predicated region fallthrough
CT: control target
= control target key end

     0   :  { %12 = vsyncpa [#allocation3], 0  ;;  %s4211_s0 = inlined_call_operand.hbm [shape: bf16[16,128], index: 0, kind: input, shape index: {}]   ;;  %s4212_s1 = inlined_call_operand.hbm [shape: bf16[128,1024], index: 1, kind: input, shape index: {}]   ;;  %s4213_s2 = inlined_call_operand.hbm [shape: f32[1,1024], index: 2, kind: input, shape index: {}]   ;;  %s4214_s3 = inlined_call_operand.hbm [shape: bf16[1024,512], index: 3, kind: input, shape index: {}]   ;;  %s4215_s4 = inlined_call_operand.vmem [shape: f32[1,512], index: 4, kind: input, shape index: {}]   ;;  %s4216_s5 = inlined_call_operand.hbm [shape: bf16[512,128], index: 5, kind: input, shape index: {}]   ;;  %s4217_s6 = inlined_call_operand.vmem [shape: f32[1,128], index: 6, kind: input, shape index: {}]   ;;  %s4218_s7 = inlined_call_operand.hbm [shape: f32[16,128], index: 7, kind: output, shape index: {}]  }
   0x1   :  { %13 = vsyncpa [#allocation6], 0 }
   0x2   :  { %14 = vsyncpa [#allocation9], 0 }
   0x3   :  { %15 = vsyncpa [#allocation4], 0  ;;  %s4006_s24 = smov [#allocation5]   ;;  %s3866_s28 = scalar_lea.hbm %s4212_s1, 8192 }
   0x4   :  { %s33_s25 = sshll.u32 %s4006_s24, 4  ;;  %p3867_p0 = scmp.ne.s32.totalorder %s4212_s1, %s3866_s28  ;;  %s34_s25 = int_to_ptr.vmem [resolvable:$true] %s33_s25 }
   0x5   :  { %p3870_p1 = scmp.lt.u32.totalorder %s3866_s28, %s4212_s1 }
   0x7   :  { %p3872_p2 = pnand %p3870_p1, %p3867_p0 }
   0x9   :  { %3875 = shalt.err (!%p3872_p2)
}
   0xa   :  { %s3876_s10 = scalar_lea.vmem %s34_s25, 8192  ;;  %p3881_p4 = scmp.lt.s32.totalorder %s34_s25, %s34_s25 }
   0xb   :  { %p3877_p3 = scmp.ne.s32.totalorder %s34_s25, %s3876_s10  ;;  %p3882_p5 = scmp.lt.s32.totalorder %s3876_s10, %s3876_s10 }
   0xd   :  { %p3883_p6 = por %p3882_p5, %p3881_p4 }
   0xf   :  { %p3884_p7 = pnand %p3883_p6, %p3877_p3 }
  0x11   :  { %3887 = shalt.err (!%p3884_p7)
}
  0x12   :  { %s4007_s11 = smov 512   ;;  %s4008_s12 = smov 32  }
  0x13   :  { %39 = dma.hbm_to_vmem [thread:$0]  %s4212_s1, 8192, %s34_s25, [#allocation6], %s4007_s11, %s4007_s11, %s4008_s12  }
  0x14   :  { %s4009_s15 = smov [#allocation8]   ;;  %s3888_s19 = scalar_lea.hbm %s4214_s3, 32768 }
  0x15   :  { %s55_s16 = sshll.u32 %s4009_s15, 4  ;;  %p3889_p8 = scmp.ne.s32.totalorder %s4214_s3, %s3888_s19  ;;  %s56_s16 = int_to_ptr.vmem [resolvable:$true] %s55_s16 }
  0x16   :  { %p3892_p9 = scmp.lt.u32.totalorder %s3888_s19, %s4214_s3 }
  0x18   :  { %p3894_p10 = pnand %p3892_p9, %p3889_p8 }
  0x1a   :  { %3897 = shalt.err (!%p3894_p10)
}
  0x1b   :  { %s3898_s24 = scalar_lea.vmem %s56_s16, 32768  ;;  %p3903_p12 = scmp.lt.s32.totalorder %s56_s16, %s56_s16 }
  0x1c   :  { %p3899_p11 = scmp.ne.s32.totalorder %s56_s16, %s3898_s24  ;;  %p3904_p13 = scmp.lt.s32.totalorder %s3898_s24, %s3898_s24 }
  0x1e   :  { %p3905_p0 = por %p3904_p13, %p3903_p12 }
  0x20   :  { %p3906_p1 = pnand %p3905_p0, %p3899_p11 }
  0x22   :  { %3909 = shalt.err (!%p3906_p1)
}
  0x23   :  { %s4010_s1 = smov 256   ;;  %s4011_s25 = smov 16  }
  0x24   :  { %61 = dma.hbm_to_vmem [thread:$0]  %s4214_s3, 32768, %s56_s16, [#allocation9], %s4010_s1, %s4010_s1, %s4011_s25  }
  0x25   :  { %s4012_s28 = smov [#allocation2]   ;;  %s3910_s9 = scalar_lea.hbm %s4211_s0, 128 }
  0x26   :  { %s21_s29 = sshll.u32 %s4012_s28, 4  ;;  %p3911_p2 = scmp.ne.s32.totalorder %s4211_s0, %s3910_s9  ;;  %s22_s29 = int_to_ptr.vmem [resolvable:$true] %s21_s29 }
  0x27   :  { %p3914_p3 = scmp.lt.u32.totalorder %s3910_s9, %s4211_s0 }
  0x29   :  { %p3916_p4 = pnand %p3914_p3, %p3911_p2 }
  0x2b   :  { %3919 = shalt.err (!%p3916_p4)
}
  0x2c   :  { %s3920_s14 = scalar_lea.vmem %s22_s29, 128  ;;  %p3925_p6 = scmp.lt.s32.totalorder %s22_s29, %s22_s29 }
  0x2d   :  { %p3921_p5 = scmp.ne.s32.totalorder %s22_s29, %s3920_s14  ;;  %p3926_p7 = scmp.lt.s32.totalorder %s3920_s14, %s3920_s14 }
  0x2f   :  { %p3927_p8 = por %p3926_p7, %p3925_p6 }
  0x31   :  { %p3928_p9 = pnand %p3927_p8, %p3921_p5 }
  0x33   :  { %3931 = shalt.err (!%p3928_p9)
}
  0x34   :  { %s4013_s3 = smov 64   ;;  %s4014_s15 = smov 4  }
  0x35   :  { %27 = dma.hbm_to_vmem [thread:$0]  %s4211_s0, 128, %s22_s29, [#allocation3], %s4013_s3, %s4013_s3, %s4014_s15  }
  0x36   :  { %s4015_s18 = smov [#allocation7]   ;;  %s4016_s20 = smov [#allocation10]  }
  0x37   :  { %s46_s19 = sshll.u32 %s4015_s18, 4  ;;  %s69_s21 = sshll.u32 %s4016_s20, 4  ;;  %s47_s19 = int_to_ptr.vmem [resolvable:$true] %s46_s19  ;;  %s70_s21 = int_to_ptr.vmem [resolvable:$true] %s69_s21 }
  0x38   :  { %s3932_s24 = scalar_lea.hbm %s4213_s2, 128 }
  0x39   :  { %p3933_p10 = scmp.ne.s32.totalorder %s4213_s2, %s3932_s24  ;;  %p3936_p11 = scmp.lt.u32.totalorder %s3932_s24, %s4213_s2 }
  0x3b   :  { %p3938_p12 = pnand %p3936_p11, %p3933_p10 }
  0x3d   :  { %3941 = shalt.err (!%p3938_p12)
}
  0x3e   :  { %s3942_s0 = scalar_lea.vmem %s47_s19, 128  ;;  %p3947_p0 = scmp.lt.s32.totalorder %s47_s19, %s47_s19 }
  0x3f   :  { %p3943_p13 = scmp.ne.s32.totalorder %s47_s19, %s3942_s0  ;;  %p3948_p1 = scmp.lt.s32.totalorder %s3942_s0, %s3942_s0 }
  0x41   :  { %p3949_p2 = por %p3948_p1, %p3947_p0 }
  0x43   :  { %p3950_p3 = pnand %p3949_p2, %p3943_p13 }
  0x45   :  { %3953 = shalt.err (!%p3950_p3)
}
  0x46   :  { %49 = dma.hbm_to_vmem [thread:$0]  %s4213_s2, 128, %s47_s19, [#allocation6]  }
  0x47   :  { %s3954_s9 = scalar_lea.hbm %s4216_s5, 4096 }
  0x48   :  { %p3955_p4 = scmp.ne.s32.totalorder %s4216_s5, %s3954_s9  ;;  %p3958_p5 = scmp.lt.u32.totalorder %s3954_s9, %s4216_s5 }
  0x4a   :  { %p3960_p6 = pnand %p3958_p5, %p3955_p4 }
  0x4c   :  { %3963 = shalt.err (!%p3960_p6)
}
  0x4d   :  { %s3964_s14 = scalar_lea.vmem %s70_s21, 4096  ;;  %p3969_p8 = scmp.lt.s32.totalorder %s70_s21, %s70_s21 }
  0x4e   :  { %p3965_p7 = scmp.ne.s32.totalorder %s70_s21, %s3964_s14  ;;  %p3970_p9 = scmp.lt.s32.totalorder %s3964_s14, %s3964_s14 }
  0x50   :  { %p3971_p10 = por %p3970_p9, %p3969_p8 }
  0x52   :  { %p3972_p11 = pnand %p3971_p10, %p3965_p7 }
  0x54   :  { %3975 = shalt.err (!%p3972_p11)
}
  0x55   :  { %75 = dma.hbm_to_vmem [thread:$0]  %s4216_s5, 4096, %s70_s21, [#allocation9], %s4013_s3, %s4013_s3, %s4014_s15  }
  0x56   :  { %3998 = dma.done.wait [#allocation3], 128  }
  0x57   :  { %3999 = vsyncadd [#allocation3], 4294967168 }
  0x58   :  { %4000 = dma.done.wait [#allocation6], 8320  }
  0x59   :  { %4001 = vsyncadd [#allocation6], 4294958976 }
  0x5a   :  { %4002 = dma.done.wait [#allocation9], 36864  }
  0x5b   :  { %4003 = vsyncadd [#allocation9], 4294930432  ;;  %v4017_v0 = vmov 0   ;;  %v96_v1 = vld [vmem:[#allocation5] sm:$0xff]  ;;  %v97_v14 = vld [vmem:[#allocation5 + $0x8] sm:$0xff]  ;;  %s4018_s17 = smov [#allocation11]  }
  0x5c   :  { %560 = vmatprep.mubr.bf16.mxu0 %v4017_v0  ;;  %603 = vmatprep.mubr.bf16.mxu1 %v4017_v0  ;;  %v100_v2 = vld [vmem:[#allocation5 + $0x20] sm:$0xff]  ;;  %v101_v15 = vld [vmem:[#allocation5 + $0x28] sm:$0xff]  ;;  %v98_v57 = vld [vmem:[#allocation5 + $0x10] sm:$0xff]  ;;  %s2990_s18 = sshll.u32 %s4018_s17, 4  ;;  %s2991_s18 = int_to_ptr.vmem [resolvable:$true] %s2990_s18 }
  0x5d   :  { %v104_v3 = vld [vmem:[#allocation5 + $0x40] sm:$0xff]  ;;  %v3006_v4 = vcombine.high %v96_v1, %v100_v2  ;;  %v3005_v5 = vcombine.low %v96_v1, %v100_v2  ;;  %v3008_v16 = vcombine.high %v97_v14, %v101_v15  ;;  %v3007_v17 = vcombine.low %v97_v14, %v101_v15  ;;  %v105_v18 = vld [vmem:[#allocation5 + $0x48] sm:$0xff]  ;;  %v102_v59 = vld [vmem:[#allocation5 + $0x30] sm:$0xff]  ;;  %p3981_p13 = scmp.lt.s32.totalorder %s2991_s18, %s2991_s18 }
  0x5e   :  { %v108_v6 = vld [vmem:[#allocation5 + $0x60] sm:$0xff]  ;;  %v109_v19 = vld [vmem:[#allocation5 + $0x68] sm:$0xff]  ;;  %v3010_v1 = vcombine.high %v98_v57, %v102_v59  ;;  %v106_v2 = vld [vmem:[#allocation5 + $0x50] sm:$0xff] }
  0x5f   :  { %v3014_v7 = vcombine.high %v104_v3, %v108_v6  ;;  %v112_v8 = vld [vmem:[#allocation5 + $0x80] sm:$0xff]  ;;  %528 = vmatprep.subr.bf16.mxu0 %v3006_v4  ;;  %v3013_v10 = vcombine.low %v104_v3, %v108_v6  ;;  %v3016_v21 = vcombine.high %v105_v18, %v109_v19  ;;  %v113_v22 = vld [vmem:[#allocation5 + $0x88] sm:$0xff]  ;;  %571 = vmatprep.subr.bf16.mxu1 %v3008_v16  ;;  %v110_v4 = vld [vmem:[#allocation5 + $0x70] sm:$0xff] }
  0x60   :  { %v116_v9 = vld [vmem:[#allocation5 + $0xa0] sm:$0xff]  ;;  %529 = vmatpush1.bf16.msra.mxu0 %v3005_v5  ;;  %v117_v23 = vld [vmem:[#allocation5 + $0xa8] sm:$0xff]  ;;  %572 = vmatpush1.bf16.msra.mxu1 %v3007_v17  ;;  %v3015_v27 = vcombine.low %v105_v18, %v109_v19  ;;  %v4129_v5 = vld [vmem:[#allocation2] sm:$0xff]   ;;  %v3017_v15 = vcombine.low %v106_v2, %v110_v4 }
  0x61   :  { %530 = vmatprep.subr.bf16.mxu0 %v3014_v7  ;;  %v3022_v11 = vcombine.high %v112_v8, %v116_v9  ;;  %v120_v12 = vld [vmem:[#allocation5 + $0xc0] sm:$0xff]  ;;  %v3021_v20 = vcombine.low %v112_v8, %v116_v9  ;;  %573 = vmatprep.subr.bf16.mxu1 %v3016_v21  ;;  %v3024_v28 = vcombine.high %v113_v22, %v117_v23  ;;  %v121_v30 = vld [vmem:[#allocation5 + $0xc8] sm:$0xff]  ;;  %v99_v8 = vld [vmem:[#allocation5 + $0x18] sm:$0xff] }
  0x62   :  { %v124_v13 = vld [vmem:[#allocation5 + $0xe0] sm:$0xff]  ;;  %v125_v31 = vld [vmem:[#allocation5 + $0xe8] sm:$0xff]  ;;  %v3023_v35 = vcombine.low %v113_v22, %v117_v23  ;;  %v3009_v7 = vcombine.low %v98_v57, %v102_v59  ;;  %v103_v9 = vld [vmem:[#allocation5 + $0x38] sm:$0xff] }
  0x63   :  { %v3030_v24 = vcombine.high %v120_v12, %v124_v13  ;;  %v128_v25 = vld [vmem:[#allocation5 + $0x100] sm:$0xff]  ;;  %v3029_v29 = vcombine.low %v120_v12, %v124_v13  ;;  %v3032_v36 = vcombine.high %v121_v30, %v125_v31  ;;  %v129_v38 = vld [vmem:[#allocation5 + $0x108] sm:$0xff]  ;;  %v3031_v43 = vcombine.low %v121_v30, %v125_v31  ;;  %v118_v13 = vld [vmem:[#allocation5 + $0xb0] sm:$0xff] }
  0x64   :  { %531 = vmatpush1.bf16.msra.mxu0 %v3013_v10  ;;  %v132_v26 = vld [vmem:[#allocation5 + $0x120] sm:$0xff]  ;;  %574 = vmatpush1.bf16.msra.mxu1 %v3015_v27  ;;  %v133_v39 = vld [vmem:[#allocation5 + $0x128] sm:$0xff]  ;;  %v3018_v10 = vcombine.high %v106_v2, %v110_v4  ;;  %v3012_v14 = vcombine.high %v99_v8, %v103_v9  ;;  %v107_v16 = vld [vmem:[#allocation5 + $0x58] sm:$0xff]  ;;  %v3011_v21 = vcombine.low %v99_v8, %v103_v9 }
  0x65   :  { %532 = vmatprep.subr.bf16.mxu0 %v3022_v11  ;;  %v3038_v32 = vcombine.high %v128_v25, %v132_v26  ;;  %v136_v33 = vld [vmem:[#allocation5 + $0x140] sm:$0xff]  ;;  %575 = vmatprep.subr.bf16.mxu1 %v3024_v28  ;;  %v3037_v37 = vcombine.low %v128_v25, %v132_v26  ;;  %v3040_v44 = vcombine.high %v129_v38, %v133_v39  ;;  %v137_v46 = vld [vmem:[#allocation5 + $0x148] sm:$0xff]  ;;  %v114_v11 = vld [vmem:[#allocation5 + $0x90] sm:$0xff] }
  0x66   :  { %v140_v34 = vld [vmem:[#allocation5 + $0x160] sm:$0xff]  ;;  %v141_v47 = vld [vmem:[#allocation5 + $0x168] sm:$0xff]  ;;  %v3039_v51 = vcombine.low %v129_v38, %v133_v39  ;;  %v111_v17 = vld [vmem:[#allocation5 + $0x78] sm:$0xff]  ;;  %v3026_v18 = vcombine.high %v114_v11, %v118_v13  ;;  %v3025_v23 = vcombine.low %v114_v11, %v118_v13 }
  0x67   :  { %v3046_v40 = vcombine.high %v136_v33, %v140_v34  ;;  %v144_v41 = vld [vmem:[#allocation5 + $0x180] sm:$0xff]  ;;  %v3045_v45 = vcombine.low %v136_v33, %v140_v34  ;;  %v3048_v52 = vcombine.high %v137_v46, %v141_v47  ;;  %v145_v54 = vld [vmem:[#allocation5 + $0x188] sm:$0xff]  ;;  %v3047_v58 = vcombine.low %v137_v46, %v141_v47  ;;  %v122_v19 = vld [vmem:[#allocation5 + $0xd0] sm:$0xff] }
  0x68   :  { %533 = vmatpush1.bf16.msra.mxu0 %v3021_v20  ;;  %v148_v42 = vld [vmem:[#allocation5 + $0x1a0] sm:$0xff]  ;;  %576 = vmatpush1.bf16.msra.mxu1 %v3023_v35  ;;  %v149_v55 = vld [vmem:[#allocation5 + $0x1a8] sm:$0xff]  ;;  %v126_v20 = vld [vmem:[#allocation5 + $0xf0] sm:$0xff]  ;;  %v3020_v22 = vcombine.high %v107_v16, %v111_v17 }
  0x69   :  { %534 = vmatprep.subr.bf16.mxu0 %v3030_v24  ;;  %577 = vmatprep.subr.bf16.mxu1 %v3032_v36  ;;  %v3054_v48 = vcombine.high %v144_v41, %v148_v42  ;;  %v152_v49 = vld [vmem:[#allocation5 + $0x1c0] sm:$0xff]  ;;  %v3053_v53 = vcombine.low %v144_v41, %v148_v42  ;;  %v3056_v60 = vcombine.high %v145_v54, %v149_v55  ;;  %v153_v62 = vld [vmem:[#allocation5 + $0x1c8] sm:$0xff]  ;;  %v115_v24 = vld [vmem:[#allocation5 + $0x98] sm:$0xff] }
  0x6a   :  { %v156_v50 = vld [vmem:[#allocation5 + $0x1e0] sm:$0xff]  ;;  %v157_v63 = vld [vmem:[#allocation5 + $0x1e8] sm:$0xff]  ;;  %v3055_v3 = vcombine.low %v145_v54, %v149_v55  ;;  %v119_v25 = vld [vmem:[#allocation5 + $0xb8] sm:$0xff]  ;;  %v3034_v26 = vcombine.high %v122_v19, %v126_v20  ;;  %v3033_v31 = vcombine.low %v122_v19, %v126_v20 }
  0x6b   :  { %v3062_v56 = vcombine.high %v152_v49, %v156_v50  ;;  %v3061_v61 = vcombine.low %v152_v49, %v156_v50  ;;  %v3064_v6 = vcombine.high %v153_v62, %v157_v63  ;;  %v3063_v12 = vcombine.low %v153_v62, %v157_v63  ;;  %v130_v27 = vld [vmem:[#allocation5 + $0x110] sm:$0xff]  ;;  %v127_v33 = vld [vmem:[#allocation5 + $0xf8] sm:$0xff] }
  0x6c   :  { %535 = vmatpush1.bf16.msra.mxu0 %v3029_v29  ;;  %578 = vmatpush1.bf16.msra.mxu1 %v3031_v43  ;;  %v134_v28 = vld [vmem:[#allocation5 + $0x130] sm:$0xff]  ;;  %v3019_v29 = vcombine.low %v107_v16, %v111_v17  ;;  %v3028_v30 = vcombine.high %v115_v24, %v119_v25  ;;  %v135_v41 = vld [vmem:[#allocation5 + $0x138] sm:$0xff] }
  0x6d   :  { %536 = vmatprep.subr.bf16.mxu0 %v3038_v32  ;;  %579 = vmatprep.subr.bf16.mxu1 %v3040_v44  ;;  %v123_v32 = vld [vmem:[#allocation5 + $0xd8] sm:$0xff]  ;;  %v3042_v34 = vcombine.high %v130_v27, %v134_v28  ;;  %v138_v35 = vld [vmem:[#allocation5 + $0x150] sm:$0xff]  ;;  %v3041_v39 = vcombine.low %v130_v27, %v134_v28 }
  0x6e   :  { %v142_v36 = vld [vmem:[#allocation5 + $0x170] sm:$0xff]  ;;  %v3036_v38 = vcombine.high %v123_v32, %v127_v33  ;;  %v3035_v44 = vcombine.low %v123_v32, %v127_v33  ;;  %v139_v47 = vld [vmem:[#allocation5 + $0x158] sm:$0xff] }
  0x6f   :  { %v146_v42 = vld [vmem:[#allocation5 + $0x190] sm:$0xff]  ;;  %v3049_v46 = vcombine.low %v138_v35, %v142_v36  ;;  %v147_v55 = vld [vmem:[#allocation5 + $0x198] sm:$0xff] }
  0x70   :  { %537 = vmatpush1.bf16.msra.mxu0 %v3037_v37  ;;  %580 = vmatpush1.bf16.msra.mxu1 %v3039_v51  ;;  %v3027_v37 = vcombine.low %v115_v24, %v119_v25  ;;  %v150_v43 = vld [vmem:[#allocation5 + $0x1b0] sm:$0xff]  ;;  %v3452_v62 = vld [vmem:[#allocation8 + $0x4] ss:$16 sps:$4 sm:$0xff]   ;;  %v3450_v2 = vld [vmem:[#allocation8] ss:$16 sps:$4 sm:$0xff]  }
  0x71   :  { %538 = vmatprep.subr.bf16.mxu0 %v3046_v40  ;;  %581 = vmatprep.subr.bf16.mxu1 %v3048_v52  ;;  %v131_v40 = vld [vmem:[#allocation5 + $0x118] sm:$0xff]  ;;  %v3058_v49 = vcombine.high %v146_v42, %v150_v43  ;;  %v154_v50 = vld [vmem:[#allocation5 + $0x1d0] sm:$0xff]  ;;  %v3057_v54 = vcombine.low %v146_v42, %v150_v43 }
  0x72   :  { %v158_v51 = vld [vmem:[#allocation5 + $0x1f0] sm:$0xff]  ;;  %v3043_v52 = vcombine.low %v131_v40, %v135_v41  ;;  %v3458_v4 = vld [vmem:[#allocation8 + $0x24] ss:$16 sps:$4 sm:$0xff]   ;;  %v3456_v8 = vld [vmem:[#allocation8 + $0x20] ss:$16 sps:$4 sm:$0xff]  }
  0x73   :  { %v3066_v57 = vcombine.high %v154_v50, %v158_v51  ;;  %v3065_v63 = vcombine.low %v154_v50, %v158_v51  ;;  %v3464_v9 = vld [vmem:[#allocation8 + $0x44] ss:$16 sps:$4 sm:$0xff]   ;;  %v3461_v11 = vld [vmem:[#allocation8 + $0x2c] ss:$16 sps:$4 sm:$0xff]   ;;  %v3468_v16 = vld [vmem:[#allocation8 + $0x60] ss:$16 sps:$4 sm:$0xff]  }
  0x74   :  { %539 = vmatpush1.bf16.msra.mxu0 %v3045_v45  ;;  %582 = vmatpush1.bf16.msra.mxu1 %v3047_v58  ;;  %v3044_v45 = vcombine.high %v131_v40, %v135_v41  ;;  %v3470_v13 = vld [vmem:[#allocation8 + $0x64] ss:$16 sps:$4 sm:$0xff]   ;;  %v3473_v19 = vld [vmem:[#allocation8 + $0x6c] ss:$16 sps:$4 sm:$0xff]   ;;  %v3474_v20 = vld [vmem:[#allocation8 + $0x80] ss:$16 sps:$4 sm:$0xff]  }
  0x75   :  { %540 = vmatprep.subr.bf16.mxu0 %v3054_v48  ;;  %583 = vmatprep.subr.bf16.mxu1 %v3056_v60  ;;  %v143_v48 = vld [vmem:[#allocation5 + $0x178] sm:$0xff]  ;;  %v3477_v25 = vld [vmem:[#allocation8 + $0x88] ss:$16 sps:$4 sm:$0xff]  }
  0x76   :  { %v3051_v58 = vcombine.low %v139_v47, %v143_v48  ;;  %v155_v60 = vld [vmem:[#allocation5 + $0x1d8] sm:$0xff]  ;;  %v3489_v33 = vld [vmem:[#allocation8 + $0xc8] ss:$16 sps:$4 sm:$0xff]  }
  0x77   :  { %v3476_v17 = vld [vmem:[#allocation8 + $0x84] ss:$16 sps:$4 sm:$0xff]   ;;  %v3486_v27 = vld [vmem:[#allocation8 + $0xc0] ss:$16 sps:$4 sm:$0xff]   ;;  %v3501_v41 = vld [vmem:[#allocation8 + $0x108] ss:$16 sps:$4 sm:$0xff]  }
  0x78   :  { %541 = vmatpush1.bf16.msra.mxu0 %v3053_v53  ;;  %584 = vmatpush1.bf16.msra.mxu1 %v3055_v3  ;;  %v3052_v53 = vcombine.high %v139_v47, %v143_v48  ;;  %v3488_v24 = vld [vmem:[#allocation8 + $0xc4] ss:$16 sps:$4 sm:$0xff]   ;;  %v3510_v42 = vld [vmem:[#allocation8 + $0x140] ss:$16 sps:$4 sm:$0xff]   ;;  %v3513_v48 = vld [vmem:[#allocation8 + $0x148] ss:$16 sps:$4 sm:$0xff]  }
  0x79   :  { %542 = vmatprep.subr.bf16.mxu0 %v3062_v56  ;;  %585 = vmatprep.subr.bf16.mxu1 %v3064_v6  ;;  %v151_v56 = vld [vmem:[#allocation5 + $0x1b8] sm:$0xff]  ;;  %v3455_v6 = vld [vmem:[#allocation8 + $0xc] ss:$16 sps:$4 sm:$0xff]  }
  0x7a   :  { %v3060_v59 = vcombine.high %v147_v55, %v151_v56  ;;  %v3494_v28 = vld [vmem:[#allocation8 + $0xe4] ss:$16 sps:$4 sm:$0xff]   ;;  %v3522_v50 = vld [vmem:[#allocation8 + $0x180] ss:$16 sps:$4 sm:$0xff]  }
  0x7b   :  { %v3500_v32 = vld [vmem:[#allocation8 + $0x104] ss:$16 sps:$4 sm:$0xff]  }
  0x7c   :  { %543 = vmatpush1.bf16.msra.mxu0 %v3061_v61  ;;  %586 = vmatpush1.bf16.msra.mxu1 %v3063_v12  ;;  %v159_v61 = vld [vmem:[#allocation5 + $0x1f8] sm:$0xff] }
  0x7d   :  { %614 = vmatprep.subr.bf16.mxu0 %v3010_v1  ;;  %657 = vmatprep.subr.bf16.mxu1 %v3012_v14  ;;  %v3059_v1 = vcombine.low %v147_v55, %v151_v56  ;;  %v3068_v3 = vcombine.high %v155_v60, %v159_v61  ;;  %v3462_v12 = vld [vmem:[#allocation8 + $0x40] ss:$16 sps:$4 sm:$0xff]   ;;  %v3459_v14 = vld [vmem:[#allocation8 + $0x28] ss:$16 sps:$4 sm:$0xff]   ;;  %v3512_v40 = vld [vmem:[#allocation8 + $0x144] ss:$16 sps:$4 sm:$0xff]  }
  0x7e   :  { %v3518_v43 = vld [vmem:[#allocation8 + $0x164] ss:$16 sps:$4 sm:$0xff]   ;;  %v3525_v55 = vld [vmem:[#allocation8 + $0x188] ss:$16 sps:$4 sm:$0xff]  }
  0x7f   :  { %561 = vmatmul.mubr.bf16.vlgmr.msra.gmra.mrb[0].mxu0 %v4129_v5  ;;  %604 = vmatmul.mubr.bf16.vlgmr.msra.gmra.mrb[0].mxu1 %v4129_v5  ;;  %v3524_v47 = vld [vmem:[#allocation8 + $0x184] ss:$16 sps:$4 sm:$0xff]  }
  0x80   :  { %615 = vmatpush1.bf16.msra.mxu0 %v3009_v7  ;;  %646 = vmatprep.mubr.bf16.mxu0 %v4017_v0  ;;  %v3067_v7 = vcombine.low %v155_v60, %v159_v61  ;;  %v3530_v51 = vld [vmem:[#allocation8 + $0x1a4] ss:$16 sps:$4 sm:$0xff]   ;;  %v3539_v61 = vld [vmem:[#allocation8 + $0x1cc] ss:$16 sps:$4 sm:$0xff]  }
  0x81   :  { %616 = vmatprep.subr.bf16.mxu0 %v3018_v10  ;;  %658 = vmatpush1.bf16.msra.mxu1 %v3011_v21  ;;  %v3453_v10 = vld [vmem:[#allocation8 + $0x8] ss:$16 sps:$4 sm:$0xff]   ;;  %v3482_v21 = vld [vmem:[#allocation8 + $0xa4] ss:$16 sps:$4 sm:$0xff]  }
  0x82   :  { %689 = vmatprep.mubr.bf16.mxu1 %v4017_v0  ;;  %659 = vmatprep.subr.bf16.mxu1 %v3020_v22  ;;  %v3050_v0 = vcombine.high %v138_v35, %v142_v36  ;;  %v3471_v22 = vld [vmem:[#allocation8 + $0x68] ss:$16 sps:$4 sm:$0xff]   ;;  %v3498_v35 = vld [vmem:[#allocation8 + $0x100] ss:$16 sps:$4 sm:$0xff]   ;;  %v3506_v36 = vld [vmem:[#allocation8 + $0x124] ss:$16 sps:$4 sm:$0xff]  }
  0x83   :  { %v3536_v56 = vld [vmem:[#allocation8 + $0x1c4] ss:$16 sps:$4 sm:$0xff]  }
  0x84   :  { %617 = vmatpush1.bf16.msra.mxu0 %v3017_v15  ;;  %v3467_v15 = vld [vmem:[#allocation8 + $0x4c] ss:$16 sps:$4 sm:$0xff]   ;;  %v3542_v60 = vld [vmem:[#allocation8 + $0x1e4] ss:$16 sps:$4 sm:$0xff]  }
  0x85   :  { %618 = vmatprep.subr.bf16.mxu0 %v3026_v18  ;;  %660 = vmatpush1.bf16.msra.mxu1 %v3019_v29  ;;  %v3465_v18 = vld [vmem:[#allocation8 + $0x48] ss:$16 sps:$4 sm:$0xff]  }
  0x86   :  { %661 = vmatprep.subr.bf16.mxu1 %v3028_v30  ;;  %v3483_v29 = vld [vmem:[#allocation8 + $0xa8] ss:$16 sps:$4 sm:$0xff]   ;;  %v3491_v30 = vld [vmem:[#allocation8 + $0xcc] ss:$16 sps:$4 sm:$0xff]  }
  0x88   :  { %619 = vmatpush1.bf16.msra.mxu0 %v3025_v23  ;;  %v3479_v23 = vld [vmem:[#allocation8 + $0x8c] ss:$16 sps:$4 sm:$0xff]  }
  0x89   :  { %620 = vmatprep.subr.bf16.mxu0 %v3034_v26  ;;  %662 = vmatpush1.bf16.msra.mxu1 %v3027_v37  ;;  %v3485_v26 = vld [vmem:[#allocation8 + $0xac] ss:$16 sps:$4 sm:$0xff]   ;;  %v3495_v37 = vld [vmem:[#allocation8 + $0xe8] ss:$16 sps:$4 sm:$0xff]  }
  0x8a   :  { %663 = vmatprep.subr.bf16.mxu1 %v3036_v38  ;;  %v3503_v38 = vld [vmem:[#allocation8 + $0x10c] ss:$16 sps:$4 sm:$0xff]  }
  0x8c   :  { %621 = vmatpush1.bf16.msra.mxu0 %v3033_v31  ;;  %v3492_v31 = vld [vmem:[#allocation8 + $0xe0] ss:$16 sps:$4 sm:$0xff]  }
  0x8d   :  { %622 = vmatprep.subr.bf16.mxu0 %v3042_v34  ;;  %664 = vmatpush1.bf16.msra.mxu1 %v3035_v44  ;;  %v3497_v34 = vld [vmem:[#allocation8 + $0xec] ss:$16 sps:$4 sm:$0xff]   ;;  %v3507_v44 = vld [vmem:[#allocation8 + $0x128] ss:$16 sps:$4 sm:$0xff]  }
  0x8e   :  { %665 = vmatprep.subr.bf16.mxu1 %v3044_v45  ;;  %v3515_v45 = vld [vmem:[#allocation8 + $0x14c] ss:$16 sps:$4 sm:$0xff]  }
  0x90   :  { %623 = vmatpush1.bf16.msra.mxu0 %v3041_v39  ;;  %v3504_v39 = vld [vmem:[#allocation8 + $0x120] ss:$16 sps:$4 sm:$0xff]  }
  0x91   :  { %624 = vmatprep.subr.bf16.mxu0 %v3050_v0  ;;  %666 = vmatpush1.bf16.msra.mxu1 %v3043_v52  ;;  %v3509_v0 = vld [vmem:[#allocation8 + $0x12c] ss:$16 sps:$4 sm:$0xff]   ;;  %v3519_v52 = vld [vmem:[#allocation8 + $0x168] ss:$16 sps:$4 sm:$0xff]  }
  0x92   :  { %667 = vmatprep.subr.bf16.mxu1 %v3052_v53  ;;  %v3527_v53 = vld [vmem:[#allocation8 + $0x18c] ss:$16 sps:$4 sm:$0xff]  }
  0x94   :  { %625 = vmatpush1.bf16.msra.mxu0 %v3049_v46  ;;  %v3516_v46 = vld [vmem:[#allocation8 + $0x160] ss:$16 sps:$4 sm:$0xff]  }
  0x95   :  { %626 = vmatprep.subr.bf16.mxu0 %v3058_v49  ;;  %668 = vmatpush1.bf16.msra.mxu1 %v3051_v58  ;;  %v3521_v49 = vld [vmem:[#allocation8 + $0x16c] ss:$16 sps:$4 sm:$0xff]   ;;  %v3534_v58 = vld [vmem:[#allocation8 + $0x1c0] ss:$16 sps:$4 sm:$0xff]  }
  0x96   :  { %669 = vmatprep.subr.bf16.mxu1 %v3060_v59  ;;  %v3531_v59 = vld [vmem:[#allocation8 + $0x1a8] ss:$16 sps:$4 sm:$0xff]  }
  0x98   :  { %627 = vmatpush1.bf16.msra.mxu0 %v3057_v54  ;;  %v3528_v54 = vld [vmem:[#allocation8 + $0x1a0] ss:$16 sps:$4 sm:$0xff]  }
  0x99   :  { %628 = vmatprep.subr.bf16.mxu0 %v3066_v57  ;;  %670 = vmatpush1.bf16.msra.mxu1 %v3059_v1  ;;  %v3533_v57 = vld [vmem:[#allocation8 + $0x1ac] ss:$16 sps:$4 sm:$0xff]   ;;  %v3548_v1 = vld [vmem:[#allocation8 + $0x204] ss:$16 sps:$4 sm:$0xff]  }
  0x9a   :  { %671 = vmatprep.subr.bf16.mxu1 %v3068_v3  ;;  %v3543_v3 = vld [vmem:[#allocation8 + $0x1e8] ss:$16 sps:$4 sm:$0xff]  }
  0x9c   :  { %629 = vmatpush1.bf16.msra.mxu0 %v3065_v63  ;;  %v3537_v63 = vld [vmem:[#allocation8 + $0x1c8] ss:$16 sps:$4 sm:$0xff]  }
  0x9d   :  { %2282 = vmatprep.subr.bf16.mxu0 %v3452_v62  ;;  %672 = vmatpush1.bf16.msra.mxu1 %v3067_v7  ;;  %v3540_v62 = vld [vmem:[#allocation8 + $0x1e0] ss:$16 sps:$4 sm:$0xff]  }
  0x9e   :  { %2454 = vmatprep.subr.bf16.mxu1 %v3455_v6  ;;  %v162_v6 = vlaneseq }
  0x9f   :  { %647 = vmatmul.mubr.bf16.vlgmr.msra.gmra.mrb[4].mxu0 %v4129_v5 }
  0xa0   :  { %2283 = vmatpush1.bf16.msra.mxu0 %v3450_v2  ;;  %690 = vmatmul.mubr.bf16.vlgmr.msra.gmra.mrb[4].mxu1 %v4129_v5  ;;  %v3480_v5 = vld [vmem:[#allocation8 + $0xa0] ss:$16 sps:$4 sm:$0xff]   ;;  %v3545_v2 = vld [vmem:[#allocation8 + $0x1ec] ss:$16 sps:$4 sm:$0xff]   ;;  %v4137_v7 = vshrl.u32 %v162_v6, 7 }
  0xa1   :  { %2284 = vmatprep.subr.bf16.mxu0 %v3458_v4  ;;  %2455 = vmatpush1.bf16.msra.mxu1 %v3453_v10  ;;  %v3551_v4 = vld [vmem:[#allocation8 + $0x20c] ss:$16 sps:$4 sm:$0xff]  }
  0xa2   :  { %2456 = vmatprep.subr.bf16.mxu1 %v3461_v11  ;;  %v168_v10 = vsub.s32 1, %v4137_v7  ;;  %v3587_v6 = vld [vmem:[#allocation8 + $0x2cc] ss:$16 sps:$4 sm:$0xff]  }
  0xa4   :  { %2285 = vmatpush1.bf16.msra.mxu0 %v3456_v8  ;;  %v164_v8 = vsub.s32 0, %v4137_v7 }
  0xa5   :  { %2286 = vmatprep.subr.bf16.mxu0 %v3464_v9  ;;  %2457 = vmatpush1.bf16.msra.mxu1 %v3459_v14  ;;  %v4140_v9 = vld [vmem:[#allocation7] sm:$0xff] }
  0xa6   :  { %2458 = vmatprep.subr.bf16.mxu1 %v3467_v15  ;;  %v165_v11 = vrot.slane %v4140_v9, %v164_v8  ;;  %v176_v15 = vsub.s32 3, %v4137_v7 }
  0xa8   :  { %2287 = vmatpush1.bf16.msra.mxu0 %v3462_v12  ;;  %v169_v12 = vrot.slane %v4140_v9, %v168_v10 }
  0xa9   :  { %2288 = vmatprep.subr.bf16.mxu0 %v3470_v13  ;;  %2459 = vmatpush1.bf16.msra.mxu1 %v3465_v18  ;;  %v172_v13 = vsub.s32 2, %v4137_v7 }
  0xaa   :  { %2460 = vmatprep.subr.bf16.mxu1 %v3473_v19 }
  0xac   :  { %2289 = vmatpush1.bf16.msra.mxu0 %v3468_v16 }
  0xad   :  { %2290 = vmatprep.subr.bf16.mxu0 %v3476_v17  ;;  %2461 = vmatpush1.bf16.msra.mxu1 %v3471_v22  ;;  %v173_v22 = vrot.slane %v4140_v9, %v172_v13 }
  0xae   :  { %2462 = vmatprep.subr.bf16.mxu1 %v3479_v23 }
  0xb0   :  { %2291 = vmatpush1.bf16.msra.mxu0 %v3474_v20 }
  0xb1   :  { %2292 = vmatprep.subr.bf16.mxu0 %v3482_v21  ;;  %2463 = vmatpush1.bf16.msra.mxu1 %v3477_v25 }
  0xb2   :  { %2464 = vmatprep.subr.bf16.mxu1 %v3485_v26 }
  0xb4   :  { %2293 = vmatpush1.bf16.msra.mxu0 %v3480_v5  ;;  %v177_v5 = vrot.slane %v4140_v9, %v176_v15 }
  0xb5   :  { %2294 = vmatprep.subr.bf16.mxu0 %v3488_v24  ;;  %2465 = vmatpush1.bf16.msra.mxu1 %v3483_v29 }
  0xb6   :  { %2466 = vmatprep.subr.bf16.mxu1 %v3491_v30 }
  0xb8   :  { %2295 = vmatpush1.bf16.msra.mxu0 %v3486_v27 }
  0xb9   :  { %2296 = vmatprep.subr.bf16.mxu0 %v3494_v28  ;;  %2467 = vmatpush1.bf16.msra.mxu1 %v3489_v33  ;;  %v3546_v33 = vld [vmem:[#allocation8 + $0x200] ss:$16 sps:$4 sm:$0xff]  }
  0xba   :  { %2468 = vmatprep.subr.bf16.mxu1 %v3497_v34  ;;  %v3549_v34 = vld [vmem:[#allocation8 + $0x208] ss:$16 sps:$4 sm:$0xff]  }
  0xbc   :  { %2297 = vmatpush1.bf16.msra.mxu0 %v3492_v31 }
  0xbd   :  { %2298 = vmatprep.subr.bf16.mxu0 %v3500_v32  ;;  %2469 = vmatpush1.bf16.msra.mxu1 %v3495_v37  ;;  %v3554_v37 = vld [vmem:[#allocation8 + $0x224] ss:$16 sps:$4 sm:$0xff]  }
  0xbe   :  { %2470 = vmatprep.subr.bf16.mxu1 %v3503_v38  ;;  %v3557_v38 = vld [vmem:[#allocation8 + $0x22c] ss:$16 sps:$4 sm:$0xff]  }
  0xc0   :  { %2299 = vmatpush1.bf16.msra.mxu0 %v3498_v35 }
  0xc1   :  { %2300 = vmatprep.subr.bf16.mxu0 %v3506_v36  ;;  %2471 = vmatpush1.bf16.msra.mxu1 %v3501_v41 }
  0xc2   :  { %2472 = vmatprep.subr.bf16.mxu1 %v3509_v0 }
  0xc4   :  { %2301 = vmatpush1.bf16.msra.mxu0 %v3504_v39 }
  0xc5   :  { %2302 = vmatprep.subr.bf16.mxu0 %v3512_v40  ;;  %2473 = vmatpush1.bf16.msra.mxu1 %v3507_v44  ;;  %v3552_v44 = vld [vmem:[#allocation8 + $0x220] ss:$16 sps:$4 sm:$0xff]  }
  0xc6   :  { %2474 = vmatprep.subr.bf16.mxu1 %v3515_v45  ;;  %v3555_v45 = vld [vmem:[#allocation8 + $0x228] ss:$16 sps:$4 sm:$0xff]  }
  0xc8   :  { %2303 = vmatpush1.bf16.msra.mxu0 %v3510_v42 }
  0xc9   :  { %2304 = vmatprep.subr.bf16.mxu0 %v3518_v43  ;;  %2475 = vmatpush1.bf16.msra.mxu1 %v3513_v48  ;;  %v3563_v48 = vld [vmem:[#allocation8 + $0x24c] ss:$16 sps:$4 sm:$0xff]  }
  0xca   :  { %2476 = vmatprep.subr.bf16.mxu1 %v3521_v49 }
  0xcc   :  { %2305 = vmatpush1.bf16.msra.mxu0 %v3516_v46 }
  0xcd   :  { %2306 = vmatprep.subr.bf16.mxu0 %v3524_v47  ;;  %2477 = vmatpush1.bf16.msra.mxu1 %v3519_v52  ;;  %v3560_v47 = vld [vmem:[#allocation8 + $0x244] ss:$16 sps:$4 sm:$0xff]   ;;  %v3561_v52 = vld [vmem:[#allocation8 + $0x248] ss:$16 sps:$4 sm:$0xff]  }
  0xce   :  { %2478 = vmatprep.subr.bf16.mxu1 %v3527_v53  ;;  %v3566_v53 = vld [vmem:[#allocation8 + $0x264] ss:$16 sps:$4 sm:$0xff]  }
  0xd0   :  { %2307 = vmatpush1.bf16.msra.mxu0 %v3522_v50 }
  0xd1   :  { %2308 = vmatprep.subr.bf16.mxu0 %v3530_v51  ;;  %2479 = vmatpush1.bf16.msra.mxu1 %v3525_v55  ;;  %v3558_v51 = vld [vmem:[#allocation8 + $0x240] ss:$16 sps:$4 sm:$0xff]  }
  0xd2   :  { %2480 = vmatprep.subr.bf16.mxu1 %v3533_v57  ;;  %v3564_v55 = vld [vmem:[#allocation8 + $0x260] ss:$16 sps:$4 sm:$0xff]   ;;  %v3572_v57 = vld [vmem:[#allocation8 + $0x284] ss:$16 sps:$4 sm:$0xff]  }
  0xd4   :  { %2309 = vmatpush1.bf16.msra.mxu0 %v3528_v54  ;;  %v3569_v54 = vld [vmem:[#allocation8 + $0x26c] ss:$16 sps:$4 sm:$0xff]  }
  0xd5   :  { %2310 = vmatprep.subr.bf16.mxu0 %v3536_v56  ;;  %2481 = vmatpush1.bf16.msra.mxu1 %v3531_v59  ;;  %v3567_v56 = vld [vmem:[#allocation8 + $0x268] ss:$16 sps:$4 sm:$0xff]   ;;  %v3570_v59 = vld [vmem:[#allocation8 + $0x280] ss:$16 sps:$4 sm:$0xff]  }
  0xd6   :  { %2482 = vmatprep.subr.bf16.mxu1 %v3539_v61  ;;  %v3578_v61 = vld [vmem:[#allocation8 + $0x2a4] ss:$16 sps:$4 sm:$0xff]  }
  0xd8   :  { %2311 = vmatpush1.bf16.msra.mxu0 %v3534_v58  ;;  %v3575_v58 = vld [vmem:[#allocation8 + $0x28c] ss:$16 sps:$4 sm:$0xff]  }
  0xd9   :  { %2312 = vmatprep.subr.bf16.mxu0 %v3542_v60  ;;  %2483 = vmatpush1.bf16.msra.mxu1 %v3537_v63  ;;  %v3573_v60 = vld [vmem:[#allocation8 + $0x288] ss:$16 sps:$4 sm:$0xff]   ;;  %v180_v63 = vsub.s32 4, %v4137_v7 }
  0xda   :  { %2484 = vmatprep.subr.bf16.mxu1 %v3545_v2  ;;  %v3576_v2 = vld [vmem:[#allocation8 + $0x2a0] ss:$16 sps:$4 sm:$0xff]  }
  0xdc   :  { %2313 = vmatpush1.bf16.msra.mxu0 %v3540_v62  ;;  %v3581_v62 = vld [vmem:[#allocation8 + $0x2ac] ss:$16 sps:$4 sm:$0xff]  }
  0xdd   :  { %2325 = vmatprep.subr.bf16.mxu0 %v3548_v1  ;;  %2485 = vmatpush1.bf16.msra.mxu1 %v3543_v3  ;;  %v184_v1 = vsub.s32 5, %v4137_v7  ;;  %v3579_v3 = vld [vmem:[#allocation8 + $0x2a8] ss:$16 sps:$4 sm:$0xff]  }
  0xde   :  { %2497 = vmatprep.subr.bf16.mxu1 %v3551_v4  ;;  %v3584_v4 = vld [vmem:[#allocation8 + $0x2c4] ss:$16 sps:$4 sm:$0xff]  }
 0x152   :  { %v562_v14 = vpop.f32.mrb[0].mxu0  ;;  %v605_v28 = vpop.f32.mrb[0].mxu1 }
 0x153   :  { %v563_v16 = vadd.f32 %v562_v14, %v165_v11  ;;  %v564_v17 = vpop.f32.mrb[1].mxu0  ;;  %v606_v30 = vadd.f32 %v605_v28, %v173_v22  ;;  %v607_v31 = vpop.f32.mrb[1].mxu1  ;;  %v188_v14 = vsub.s32 6, %v4137_v7 }
 0x154   :  { %v565_v18 = vadd.f32 %v564_v17, %v169_v12  ;;  %v566_v19 = vpop.f32.mrb[2].mxu0  ;;  %v608_v35 = vadd.f32 %v607_v31, %v177_v5  ;;  %v609_v36 = vpop.f32.mrb[2].mxu1  ;;  %v3585_v17 = vld [vmem:[#allocation8 + $0x2c8] ss:$16 sps:$4 sm:$0xff]  }
 0x155   :  { %v567_v20 = vadd.f32 %v566_v19, %v165_v11  ;;  %v568_v21 = vpop.f32.mrb[3].mxu0  ;;  %v700_v24 = vmax.f32 %v563_v16, 0.0  ;;  %v702_v39 = vmax.f32 %v606_v30, 0.0  ;;  %v610_v40 = vadd.f32 %v609_v36, %v173_v22  ;;  %v611_v41 = vpop.f32.mrb[3].mxu1  ;;  %v3582_v16 = vld [vmem:[#allocation8 + $0x2c0] ss:$16 sps:$4 sm:$0xff]  }
 0x156   :  { %v569_v23 = vadd.f32 %v568_v21, %v169_v12  ;;  %v701_v26 = vmax.f32 %v565_v18, 0.0  ;;  %v703_v0 = vmax.f32 %v608_v35, 0.0  ;;  %v612_v42 = vadd.f32 %v611_v41, %v177_v5  ;;  %v3593_v21 = vld [vmem:[#allocation8 + $0x2ec] ss:$16 sps:$4 sm:$0xff]   ;;  %v3591_v30 = vld [vmem:[#allocation8 + $0x2e8] ss:$16 sps:$4 sm:$0xff]  }
 0x157   :  { %v708_v25 = vmax.f32 %v567_v20, 0.0  ;;  %v710_v43 = vmax.f32 %v610_v40, 0.0  ;;  %v181_v11 = vrot.slane %v4140_v9, %v180_v63  ;;  %v185_v12 = vrot.slane %v4140_v9, %v184_v1  ;;  %v3590_v20 = vld [vmem:[#allocation8 + $0x2e4] ss:$16 sps:$4 sm:$0xff]   ;;  %v3599_v35 = vld [vmem:[#allocation8 + $0x30c] ss:$16 sps:$4 sm:$0xff]  }
 0x158   :  { %v709_v27 = vmax.f32 %v569_v23, 0.0  ;;  %v711_v46 = vmax.f32 %v612_v42, 0.0  ;;  %v192_v19 = vsub.s32 7, %v4137_v7  ;;  %v189_v28 = vrot.slane %v4140_v9, %v188_v14  ;;  %v3597_v42 = vld [vmem:[#allocation8 + $0x308] ss:$16 sps:$4 sm:$0xff]  }
 0x159   :  { %v716_v29 = vpack.c.bf16 %v708_v25, %v700_v24  ;;  %v4157_v49 = vpack.c.bf16 %v710_v43, %v702_v39  ;;  %v3614_v63 = vld [vmem:[#allocation8 + $0x364] ss:$16 sps:$4 sm:$0xff]   ;;  %v3617_v1 = vld [vmem:[#allocation8 + $0x36c] ss:$16 sps:$4 sm:$0xff]  }
 0x15a   :  { %v717_v32 = vpack.c.bf16 %v709_v27, %v701_v26  ;;  %v719_v50 = vpack.c.bf16 %v711_v46, %v703_v0  ;;  %v3594_v0 = vld [vmem:[#allocation8 + $0x300] ss:$16 sps:$4 sm:$0xff]   ;;  %v3605_v46 = vld [vmem:[#allocation8 + $0x32c] ss:$16 sps:$4 sm:$0xff]   ;;  %v3626_v14 = vld [vmem:[#allocation8 + $0x3a4] ss:$16 sps:$4 sm:$0xff]  }
 0x15c   :  { %2314 = vmatprep.mubr.bf16.mxu0 %v717_v32  ;;  %2486 = vmatprep.mubr.bf16.mxu1 %v717_v32 }
 0x15d   :  { %2315 = vmatmul.mubr.bf16.vlgmr.msra.gmra.mrb[8].mxu0 %v716_v29  ;;  %2487 = vmatmul.mubr.bf16.vlgmr.msra.gmra.mrb[8].mxu1 %v716_v29  ;;  %v3588_v29 = vld [vmem:[#allocation8 + $0x2e0] ss:$16 sps:$4 sm:$0xff]  }
 0x15e   :  { %2326 = vmatpush1.bf16.msra.mxu0 %v3546_v33  ;;  %2498 = vmatpush1.bf16.msra.mxu1 %v3549_v34  ;;  %v193_v33 = vrot.slane %v4140_v9, %v192_v19  ;;  %v3596_v34 = vld [vmem:[#allocation8 + $0x304] ss:$16 sps:$4 sm:$0xff]  }
 0x15f   :  { %2327 = vmatprep.subr.bf16.mxu0 %v3554_v37  ;;  %2499 = vmatprep.subr.bf16.mxu1 %v3557_v38  ;;  %v3602_v9 = vld [vmem:[#allocation8 + $0x324] ss:$16 sps:$4 sm:$0xff]  }
 0x160   :  { %2357 = vmatprep.mubr.bf16.mxu0 %v719_v50  ;;  %2529 = vmatprep.mubr.bf16.mxu1 %v719_v50  ;;  %v3632_v19 = vld [vmem:[#allocation8 + $0x3c4] ss:$16 sps:$4 sm:$0xff]  }
 0x162   :  { %2328 = vmatpush1.bf16.msra.mxu0 %v3552_v44  ;;  %2500 = vmatpush1.bf16.msra.mxu1 %v3555_v45 }
 0x163   :  { %2329 = vmatprep.subr.bf16.mxu0 %v3560_v47  ;;  %2501 = vmatprep.subr.bf16.mxu1 %v3563_v48 }
 0x166   :  { %2330 = vmatpush1.bf16.msra.mxu0 %v3558_v51  ;;  %2502 = vmatpush1.bf16.msra.mxu1 %v3561_v52 }
 0x167   :  { %2331 = vmatprep.subr.bf16.mxu0 %v3566_v53  ;;  %2503 = vmatprep.subr.bf16.mxu1 %v3569_v54  ;;  %v3600_v54 = vld [vmem:[#allocation8 + $0x320] ss:$16 sps:$4 sm:$0xff]  }
 0x16a   :  { %2332 = vmatpush1.bf16.msra.mxu0 %v3564_v55  ;;  %2504 = vmatpush1.bf16.msra.mxu1 %v3567_v56  ;;  %v3603_v55 = vld [vmem:[#allocation8 + $0x328] ss:$16 sps:$4 sm:$0xff]  }
 0x16b   :  { %2333 = vmatprep.subr.bf16.mxu0 %v3572_v57  ;;  %2505 = vmatprep.subr.bf16.mxu1 %v3575_v58  ;;  %v3608_v57 = vld [vmem:[#allocation8 + $0x344] ss:$16 sps:$4 sm:$0xff]   ;;  %v3611_v58 = vld [vmem:[#allocation8 + $0x34c] ss:$16 sps:$4 sm:$0xff]  }
 0x16e   :  { %2334 = vmatpush1.bf16.msra.mxu0 %v3570_v59  ;;  %2506 = vmatpush1.bf16.msra.mxu1 %v3573_v60 }
 0x16f   :  { %2335 = vmatprep.subr.bf16.mxu0 %v3578_v61  ;;  %2507 = vmatprep.subr.bf16.mxu1 %v3581_v62  ;;  %v3606_v61 = vld [vmem:[#allocation8 + $0x340] ss:$16 sps:$4 sm:$0xff]   ;;  %v3609_v62 = vld [vmem:[#allocation8 + $0x348] ss:$16 sps:$4 sm:$0xff]  }
 0x172   :  { %2336 = vmatpush1.bf16.msra.mxu0 %v3576_v2  ;;  %2508 = vmatpush1.bf16.msra.mxu1 %v3579_v3  ;;  %v648_v18 = vpop.f32.mrb[4].mxu0  ;;  %v3612_v2 = vld [vmem:[#allocation8 + $0x360] ss:$16 sps:$4 sm:$0xff]   ;;  %v3615_v3 = vld [vmem:[#allocation8 + $0x368] ss:$16 sps:$4 sm:$0xff]  }
 0x173   :  { %2337 = vmatprep.subr.bf16.mxu0 %v3584_v4  ;;  %2509 = vmatprep.subr.bf16.mxu1 %v3587_v6  ;;  %v649_v22 = vadd.f32 %v648_v18, %v181_v11  ;;  %v650_v23 = vpop.f32.mrb[5].mxu0  ;;  %v691_v38 = vpop.f32.mrb[4].mxu1  ;;  %v3620_v4 = vld [vmem:[#allocation8 + $0x384] ss:$16 sps:$4 sm:$0xff]   ;;  %v3623_v6 = vld [vmem:[#allocation8 + $0x38c] ss:$16 sps:$4 sm:$0xff]  }
 0x174   :  { %v651_v5 = vadd.f32 %v650_v23, %v185_v12  ;;  %v652_v24 = vpop.f32.mrb[6].mxu0  ;;  %v692_v40 = vadd.f32 %v691_v38, %v189_v28  ;;  %v693_v41 = vpop.f32.mrb[5].mxu1  ;;  %v3627_v18 = vld [vmem:[#allocation8 + $0x3a8] ss:$16 sps:$4 sm:$0xff]   ;;  %v3638_v23 = vld [vmem:[#allocation8 + $0x3e4] ss:$16 sps:$4 sm:$0xff]  }
 0x175   :  { %v704_v25 = vmax.f32 %v649_v22, 0.0  ;;  %v653_v26 = vadd.f32 %v652_v24, %v181_v11  ;;  %v654_v27 = vpop.f32.mrb[7].mxu0  ;;  %v694_v44 = vadd.f32 %v693_v41, %v193_v33  ;;  %v695_v45 = vpop.f32.mrb[6].mxu1  ;;  %v3618_v11 = vld [vmem:[#allocation8 + $0x380] ss:$16 sps:$4 sm:$0xff]  }
 0x176   :  { %2338 = vmatpush1.bf16.msra.mxu0 %v3582_v16  ;;  %2510 = vmatpush1.bf16.msra.mxu1 %v3585_v17  ;;  %v705_v31 = vmax.f32 %v651_v5, 0.0  ;;  %v655_v32 = vadd.f32 %v654_v27, %v185_v12  ;;  %v706_v47 = vmax.f32 %v692_v40, 0.0  ;;  %v696_v48 = vadd.f32 %v695_v45, %v189_v28  ;;  %v697_v50 = vpop.f32.mrb[7].mxu1  ;;  %v3621_v12 = vld [vmem:[#allocation8 + $0x388] ss:$16 sps:$4 sm:$0xff]  }
 0x177   :  { %2339 = vmatprep.subr.bf16.mxu0 %v3590_v20  ;;  %2511 = vmatprep.subr.bf16.mxu1 %v3593_v21  ;;  %v712_v36 = vmax.f32 %v653_v26, 0.0  ;;  %v707_v51 = vmax.f32 %v694_v44, 0.0  ;;  %v698_v52 = vadd.f32 %v697_v50, %v193_v33  ;;  %v3629_v16 = vld [vmem:[#allocation8 + $0x3ac] ss:$16 sps:$4 sm:$0xff]   ;;  %v3624_v17 = vld [vmem:[#allocation8 + $0x3a0] ss:$16 sps:$4 sm:$0xff]  }
 0x178   :  { %v713_v37 = vmax.f32 %v655_v32, 0.0  ;;  %v714_v53 = vmax.f32 %v696_v48, 0.0  ;;  %v3635_v20 = vld [vmem:[#allocation8 + $0x3cc] ss:$16 sps:$4 sm:$0xff]   ;;  %v3630_v21 = vld [vmem:[#allocation8 + $0x3c0] ss:$16 sps:$4 sm:$0xff]  }
 0x179   :  { %v4167_v39 = vpack.c.bf16 %v712_v36, %v704_v25  ;;  %v715_v56 = vmax.f32 %v698_v52, 0.0  ;;  %v3633_v22 = vld [vmem:[#allocation8 + $0x3c8] ss:$16 sps:$4 sm:$0xff]   ;;  %v3641_v5 = vld [vmem:[#allocation8 + $0x3ec] ss:$16 sps:$4 sm:$0xff]  }
 0x17a   :  { %2340 = vmatpush1.bf16.msra.mxu0 %v3588_v29  ;;  %2512 = vmatpush1.bf16.msra.mxu1 %v3591_v30  ;;  %v4169_v43 = vpack.c.bf16 %v713_v37, %v705_v31  ;;  %v4171_v59 = vpack.c.bf16 %v714_v53, %v706_v47  ;;  %v3636_v24 = vld [vmem:[#allocation8 + $0x3e0] ss:$16 sps:$4 sm:$0xff]   ;;  %v3639_v25 = vld [vmem:[#allocation8 + $0x3e8] ss:$16 sps:$4 sm:$0xff]   ;;  %v3644_v26 = vld [vmem:[#allocation8 + $0x404] ss:$16 sps:$4 sm:$0xff]  }
 0x17b   :  { %2341 = vmatprep.subr.bf16.mxu0 %v3596_v34  ;;  %2513 = vmatprep.subr.bf16.mxu1 %v3599_v35  ;;  %v4173_v60 = vpack.c.bf16 %v715_v56, %v707_v51  ;;  %v3647_v27 = vld [vmem:[#allocation8 + $0x40c] ss:$16 sps:$4 sm:$0xff]   ;;  %v3642_v28 = vld [vmem:[#allocation8 + $0x400] ss:$16 sps:$4 sm:$0xff]   ;;  %v3645_v29 = vld [vmem:[#allocation8 + $0x408] ss:$16 sps:$4 sm:$0xff]  }
 0x17c   :  { %v3650_v30 = vld [vmem:[#allocation8 + $0x424] ss:$16 sps:$4 sm:$0xff]   ;;  %v3653_v31 = vld [vmem:[#allocation8 + $0x42c] ss:$16 sps:$4 sm:$0xff]   ;;  %v3648_v32 = vld [vmem:[#allocation8 + $0x420] ss:$16 sps:$4 sm:$0xff]  }
 0x17d   :  { %v3651_v33 = vld [vmem:[#allocation8 + $0x428] ss:$16 sps:$4 sm:$0xff]   ;;  %v3656_v34 = vld [vmem:[#allocation8 + $0x444] ss:$16 sps:$4 sm:$0xff]   ;;  %v3659_v35 = vld [vmem:[#allocation8 + $0x44c] ss:$16 sps:$4 sm:$0xff]  }
 0x17e   :  { %2342 = vmatpush1.bf16.msra.mxu0 %v3594_v0  ;;  %2514 = vmatpush1.bf16.msra.mxu1 %v3597_v42  ;;  %v3654_v36 = vld [vmem:[#allocation8 + $0x440] ss:$16 sps:$4 sm:$0xff]   ;;  %v3657_v37 = vld [vmem:[#allocation8 + $0x448] ss:$16 sps:$4 sm:$0xff]   ;;  %v3662_v38 = vld [vmem:[#allocation8 + $0x464] ss:$16 sps:$4 sm:$0xff]  }
 0x17f   :  { %2343 = vmatprep.subr.bf16.mxu0 %v3602_v9  ;;  %2515 = vmatprep.subr.bf16.mxu1 %v3605_v46  ;;  %v3660_v40 = vld [vmem:[#allocation8 + $0x460] ss:$16 sps:$4 sm:$0xff]   ;;  %v3663_v41 = vld [vmem:[#allocation8 + $0x468] ss:$16 sps:$4 sm:$0xff]   ;;  %v3668_v0 = vld [vmem:[#allocation8 + $0x484] ss:$16 sps:$4 sm:$0xff]  }
 0x180   :  { %v3671_v42 = vld [vmem:[#allocation8 + $0x48c] ss:$16 sps:$4 sm:$0xff]   ;;  %v3666_v44 = vld [vmem:[#allocation8 + $0x480] ss:$16 sps:$4 sm:$0xff]   ;;  %v3674_v45 = vld [vmem:[#allocation8 + $0x4a4] ss:$16 sps:$4 sm:$0xff]  }
 0x181   :  { %v3677_v9 = vld [vmem:[#allocation8 + $0x4ac] ss:$16 sps:$4 sm:$0xff]   ;;  %v3672_v46 = vld [vmem:[#allocation8 + $0x4a0] ss:$16 sps:$4 sm:$0xff]   ;;  %v3675_v47 = vld [vmem:[#allocation8 + $0x4a8] ss:$16 sps:$4 sm:$0xff]  }
 0x182   :  { %2344 = vmatpush1.bf16.msra.mxu0 %v3600_v54  ;;  %2516 = vmatpush1.bf16.msra.mxu1 %v3603_v55  ;;  %v3680_v48 = vld [vmem:[#allocation8 + $0x4c4] ss:$16 sps:$4 sm:$0xff]   ;;  %v3683_v50 = vld [vmem:[#allocation8 + $0x4cc] ss:$16 sps:$4 sm:$0xff]   ;;  %v3678_v51 = vld [vmem:[#allocation8 + $0x4c0] ss:$16 sps:$4 sm:$0xff]  }
 0x183   :  { %2345 = vmatprep.subr.bf16.mxu0 %v3608_v57  ;;  %2517 = vmatprep.subr.bf16.mxu1 %v3611_v58  ;;  %v3681_v52 = vld [vmem:[#allocation8 + $0x4c8] ss:$16 sps:$4 sm:$0xff]   ;;  %v3686_v53 = vld [vmem:[#allocation8 + $0x4e4] ss:$16 sps:$4 sm:$0xff]   ;;  %v3689_v54 = vld [vmem:[#allocation8 + $0x4ec] ss:$16 sps:$4 sm:$0xff]  }
 0x184   :  { %v3684_v55 = vld [vmem:[#allocation8 + $0x4e0] ss:$16 sps:$4 sm:$0xff]   ;;  %v3687_v56 = vld [vmem:[#allocation8 + $0x4e8] ss:$16 sps:$4 sm:$0xff]   ;;  %v3692_v57 = vld [vmem:[#allocation8 + $0x504] ss:$16 sps:$4 sm:$0xff]  }
 0x185   :  { %v3695_v58 = vld [vmem:[#allocation8 + $0x50c] ss:$16 sps:$4 sm:$0xff]  }
 0x186   :  { %2346 = vmatpush1.bf16.msra.mxu0 %v3606_v61  ;;  %2518 = vmatpush1.bf16.msra.mxu1 %v3609_v62  ;;  %v3690_v61 = vld [vmem:[#allocation8 + $0x500] ss:$16 sps:$4 sm:$0xff]   ;;  %v3693_v62 = vld [vmem:[#allocation8 + $0x508] ss:$16 sps:$4 sm:$0xff]  }
 0x187   :  { %2347 = vmatprep.subr.bf16.mxu0 %v3614_v63  ;;  %2519 = vmatprep.subr.bf16.mxu1 %v3617_v1  ;;  %v3698_v63 = vld [vmem:[#allocation8 + $0x524] ss:$16 sps:$4 sm:$0xff]   ;;  %v3701_v1 = vld [vmem:[#allocation8 + $0x52c] ss:$16 sps:$4 sm:$0xff]  }
 0x18a   :  { %2348 = vmatpush1.bf16.msra.mxu0 %v3612_v2  ;;  %2520 = vmatpush1.bf16.msra.mxu1 %v3615_v3  ;;  %v3696_v2 = vld [vmem:[#allocation8 + $0x520] ss:$16 sps:$4 sm:$0xff]   ;;  %v3699_v3 = vld [vmem:[#allocation8 + $0x528] ss:$16 sps:$4 sm:$0xff]  }
 0x18b   :  { %2349 = vmatprep.subr.bf16.mxu0 %v3620_v4  ;;  %2521 = vmatprep.subr.bf16.mxu1 %v3623_v6  ;;  %v3704_v4 = vld [vmem:[#allocation8 + $0x544] ss:$16 sps:$4 sm:$0xff]   ;;  %v3707_v6 = vld [vmem:[#allocation8 + $0x54c] ss:$16 sps:$4 sm:$0xff]  }
 0x18e   :  { %2350 = vmatpush1.bf16.msra.mxu0 %v3618_v11  ;;  %2522 = vmatpush1.bf16.msra.mxu1 %v3621_v12  ;;  %v3702_v11 = vld [vmem:[#allocation8 + $0x540] ss:$16 sps:$4 sm:$0xff]   ;;  %v3705_v12 = vld [vmem:[#allocation8 + $0x548] ss:$16 sps:$4 sm:$0xff]  }
 0x18f   :  { %2351 = vmatprep.subr.bf16.mxu0 %v3626_v14  ;;  %2523 = vmatprep.subr.bf16.mxu1 %v3629_v16  ;;  %v3710_v14 = vld [vmem:[#allocation8 + $0x564] ss:$16 sps:$4 sm:$0xff]   ;;  %v3713_v16 = vld [vmem:[#allocation8 + $0x56c] ss:$16 sps:$4 sm:$0xff]  }
 0x192   :  { %2352 = vmatpush1.bf16.msra.mxu0 %v3624_v17  ;;  %2524 = vmatpush1.bf16.msra.mxu1 %v3627_v18  ;;  %v3708_v17 = vld [vmem:[#allocation8 + $0x560] ss:$16 sps:$4 sm:$0xff]   ;;  %v3711_v18 = vld [vmem:[#allocation8 + $0x568] ss:$16 sps:$4 sm:$0xff]  }
 0x193   :  { %2353 = vmatprep.subr.bf16.mxu0 %v3632_v19  ;;  %2525 = vmatprep.subr.bf16.mxu1 %v3635_v20  ;;  %v3716_v19 = vld [vmem:[#allocation8 + $0x584] ss:$16 sps:$4 sm:$0xff]   ;;  %v3719_v20 = vld [vmem:[#allocation8 + $0x58c] ss:$16 sps:$4 sm:$0xff]  }
 0x196   :  { %2354 = vmatpush1.bf16.msra.mxu0 %v3630_v21  ;;  %2526 = vmatpush1.bf16.msra.mxu1 %v3633_v22  ;;  %v3714_v21 = vld [vmem:[#allocation8 + $0x580] ss:$16 sps:$4 sm:$0xff]   ;;  %v3717_v22 = vld [vmem:[#allocation8 + $0x588] ss:$16 sps:$4 sm:$0xff]  }
 0x197   :  { %2355 = vmatprep.subr.bf16.mxu0 %v3638_v23  ;;  %2527 = vmatprep.subr.bf16.mxu1 %v3641_v5  ;;  %v3722_v23 = vld [vmem:[#allocation8 + $0x5a4] ss:$16 sps:$4 sm:$0xff]   ;;  %v3725_v5 = vld [vmem:[#allocation8 + $0x5ac] ss:$16 sps:$4 sm:$0xff]  }
 0x19a   :  { %2356 = vmatpush1.bf16.msra.mxu0 %v3636_v24  ;;  %2528 = vmatpush1.bf16.msra.mxu1 %v3639_v25  ;;  %v3720_v24 = vld [vmem:[#allocation8 + $0x5a0] ss:$16 sps:$4 sm:$0xff]   ;;  %v3723_v25 = vld [vmem:[#allocation8 + $0x5a8] ss:$16 sps:$4 sm:$0xff]  }
 0x19b   :  { %2368 = vmatprep.subr.bf16.mxu0 %v3644_v26  ;;  %2540 = vmatprep.subr.bf16.mxu1 %v3647_v27  ;;  %v3728_v26 = vld [vmem:[#allocation8 + $0x5c4] ss:$16 sps:$4 sm:$0xff]   ;;  %v3731_v27 = vld [vmem:[#allocation8 + $0x5cc] ss:$16 sps:$4 sm:$0xff]  }
 0x19d   :  { %2358 = vmatmul.mubr.bf16.vlgmr.msra.gmra.mrb[8].mxu0 %v4157_v49  ;;  %2530 = vmatmul.mubr.bf16.vlgmr.msra.gmra.mrb[8].mxu1 %v4157_v49  ;;  %v3665_v49 = vld [vmem:[#allocation8 + $0x46c] ss:$16 sps:$4 sm:$0xff]  }
 0x19e   :  { %2369 = vmatpush1.bf16.msra.mxu0 %v3642_v28  ;;  %2541 = vmatpush1.bf16.msra.mxu1 %v3645_v29  ;;  %v3726_v28 = vld [vmem:[#allocation8 + $0x5c0] ss:$16 sps:$4 sm:$0xff]   ;;  %v3729_v29 = vld [vmem:[#allocation8 + $0x5c8] ss:$16 sps:$4 sm:$0xff]  }
 0x19f   :  { %2370 = vmatprep.subr.bf16.mxu0 %v3650_v30  ;;  %2542 = vmatprep.subr.bf16.mxu1 %v3653_v31  ;;  %v3734_v30 = vld [vmem:[#allocation8 + $0x5e4] ss:$16 sps:$4 sm:$0xff]   ;;  %v3737_v31 = vld [vmem:[#allocation8 + $0x5ec] ss:$16 sps:$4 sm:$0xff]  }
 0x1a0   :  { %2400 = vmatprep.mubr.bf16.mxu0 %v4169_v43  ;;  %2572 = vmatprep.mubr.bf16.mxu1 %v4169_v43  ;;  %v3669_v43 = vld [vmem:[#allocation8 + $0x488] ss:$16 sps:$4 sm:$0xff]  }
 0x1a2   :  { %2371 = vmatpush1.bf16.msra.mxu0 %v3648_v32  ;;  %2543 = vmatpush1.bf16.msra.mxu1 %v3651_v33  ;;  %v3732_v32 = vld [vmem:[#allocation8 + $0x5e0] ss:$16 sps:$4 sm:$0xff]   ;;  %v3735_v33 = vld [vmem:[#allocation8 + $0x5e8] ss:$16 sps:$4 sm:$0xff]  }
 0x1a3   :  { %2372 = vmatprep.subr.bf16.mxu0 %v3656_v34  ;;  %2544 = vmatprep.subr.bf16.mxu1 %v3659_v35  ;;  %v3740_v34 = vld [vmem:[#allocation8 + $0x604] ss:$16 sps:$4 sm:$0xff]   ;;  %v3743_v35 = vld [vmem:[#allocation8 + $0x60c] ss:$16 sps:$4 sm:$0xff]  }
 0x1a6   :  { %2373 = vmatpush1.bf16.msra.mxu0 %v3654_v36  ;;  %2545 = vmatpush1.bf16.msra.mxu1 %v3657_v37  ;;  %v3738_v36 = vld [vmem:[#allocation8 + $0x600] ss:$16 sps:$4 sm:$0xff]   ;;  %v3741_v37 = vld [vmem:[#allocation8 + $0x608] ss:$16 sps:$4 sm:$0xff]  }
 0x1a7   :  { %2374 = vmatprep.subr.bf16.mxu0 %v3662_v38  ;;  %2546 = vmatprep.subr.bf16.mxu1 %v3665_v49  ;;  %v3746_v38 = vld [vmem:[#allocation8 + $0x624] ss:$16 sps:$4 sm:$0xff]   ;;  %v3749_v49 = vld [vmem:[#allocation8 + $0x62c] ss:$16 sps:$4 sm:$0xff]  }
 0x1aa   :  { %2375 = vmatpush1.bf16.msra.mxu0 %v3660_v40  ;;  %2547 = vmatpush1.bf16.msra.mxu1 %v3663_v41  ;;  %v3744_v40 = vld [vmem:[#allocation8 + $0x620] ss:$16 sps:$4 sm:$0xff]   ;;  %v3747_v41 = vld [vmem:[#allocation8 + $0x628] ss:$16 sps:$4 sm:$0xff]  }
 0x1ab   :  { %2376 = vmatprep.subr.bf16.mxu0 %v3668_v0  ;;  %2548 = vmatprep.subr.bf16.mxu1 %v3671_v42  ;;  %v3752_v0 = vld [vmem:[#allocation8 + $0x644] ss:$16 sps:$4 sm:$0xff]   ;;  %v3755_v42 = vld [vmem:[#allocation8 + $0x64c] ss:$16 sps:$4 sm:$0xff]  }
 0x1ae   :  { %2377 = vmatpush1.bf16.msra.mxu0 %v3666_v44  ;;  %2549 = vmatpush1.bf16.msra.mxu1 %v3669_v43  ;;  %v3750_v44 = vld [vmem:[#allocation8 + $0x640] ss:$16 sps:$4 sm:$0xff]   ;;  %v3753_v43 = vld [vmem:[#allocation8 + $0x648] ss:$16 sps:$4 sm:$0xff]  }
 0x1af   :  { %2378 = vmatprep.subr.bf16.mxu0 %v3674_v45  ;;  %2550 = vmatprep.subr.bf16.mxu1 %v3677_v9  ;;  %v3758_v45 = vld [vmem:[#allocation8 + $0x664] ss:$16 sps:$4 sm:$0xff]   ;;  %v3756_v9 = vld [vmem:[#allocation8 + $0x660] ss:$16 sps:$4 sm:$0xff]  }
 0x1b2   :  { %2379 = vmatpush1.bf16.msra.mxu0 %v3672_v46  ;;  %2551 = vmatpush1.bf16.msra.mxu1 %v3675_v47  ;;  %v3759_v46 = vld [vmem:[#allocation8 + $0x668] ss:$16 sps:$4 sm:$0xff]   ;;  %v3764_v47 = vld [vmem:[#allocation8 + $0x684] ss:$16 sps:$4 sm:$0xff]  }
 0x1b3   :  { %2380 = vmatprep.subr.bf16.mxu0 %v3680_v48  ;;  %2552 = vmatprep.subr.bf16.mxu1 %v3683_v50  ;;  %v3767_v48 = vld [vmem:[#allocation8 + $0x68c] ss:$16 sps:$4 sm:$0xff]   ;;  %v3762_v50 = vld [vmem:[#allocation8 + $0x680] ss:$16 sps:$4 sm:$0xff]  }
 0x1b6   :  { %2381 = vmatpush1.bf16.msra.mxu0 %v3678_v51  ;;  %2553 = vmatpush1.bf16.msra.mxu1 %v3681_v52  ;;  %v3770_v51 = vld [vmem:[#allocation8 + $0x6a4] ss:$16 sps:$4 sm:$0xff]   ;;  %v3773_v52 = vld [vmem:[#allocation8 + $0x6ac] ss:$16 sps:$4 sm:$0xff]  }
 0x1b7   :  { %2382 = vmatprep.subr.bf16.mxu0 %v3686_v53  ;;  %2554 = vmatprep.subr.bf16.mxu1 %v3689_v54  ;;  %v3768_v53 = vld [vmem:[#allocation8 + $0x6a0] ss:$16 sps:$4 sm:$0xff]   ;;  %v3771_v54 = vld [vmem:[#allocation8 + $0x6a8] ss:$16 sps:$4 sm:$0xff]  }
 0x1ba   :  { %2383 = vmatpush1.bf16.msra.mxu0 %v3684_v55  ;;  %2555 = vmatpush1.bf16.msra.mxu1 %v3687_v56  ;;  %v3776_v55 = vld [vmem:[#allocation8 + $0x6c4] ss:$16 sps:$4 sm:$0xff]   ;;  %v3779_v56 = vld [vmem:[#allocation8 + $0x6cc] ss:$16 sps:$4 sm:$0xff]  }
 0x1bb   :  { %2384 = vmatprep.subr.bf16.mxu0 %v3692_v57  ;;  %2556 = vmatprep.subr.bf16.mxu1 %v3695_v58  ;;  %v3774_v57 = vld [vmem:[#allocation8 + $0x6c0] ss:$16 sps:$4 sm:$0xff]   ;;  %v3777_v58 = vld [vmem:[#allocation8 + $0x6c8] ss:$16 sps:$4 sm:$0xff]  }
 0x1be   :  { %2385 = vmatpush1.bf16.msra.mxu0 %v3690_v61  ;;  %2557 = vmatpush1.bf16.msra.mxu1 %v3693_v62  ;;  %v3782_v61 = vld [vmem:[#allocation8 + $0x6e4] ss:$16 sps:$4 sm:$0xff]   ;;  %v3785_v62 = vld [vmem:[#allocation8 + $0x6ec] ss:$16 sps:$4 sm:$0xff]  }
 0x1bf   :  { %2386 = vmatprep.subr.bf16.mxu0 %v3698_v63  ;;  %2558 = vmatprep.subr.bf16.mxu1 %v3701_v1  ;;  %v3780_v63 = vld [vmem:[#allocation8 + $0x6e0] ss:$16 sps:$4 sm:$0xff]   ;;  %v3783_v1 = vld [vmem:[#allocation8 + $0x6e8] ss:$16 sps:$4 sm:$0xff]  }
 0x1c2   :  { %2387 = vmatpush1.bf16.msra.mxu0 %v3696_v2  ;;  %2559 = vmatpush1.bf16.msra.mxu1 %v3699_v3  ;;  %v3788_v2 = vld [vmem:[#allocation8 + $0x704] ss:$16 sps:$4 sm:$0xff]   ;;  %v3791_v3 = vld [vmem:[#allocation8 + $0x70c] ss:$16 sps:$4 sm:$0xff]  }
 0x1c3   :  { %2388 = vmatprep.subr.bf16.mxu0 %v3704_v4  ;;  %2560 = vmatprep.subr.bf16.mxu1 %v3707_v6  ;;  %v3786_v4 = vld [vmem:[#allocation8 + $0x700] ss:$16 sps:$4 sm:$0xff]   ;;  %v3789_v6 = vld [vmem:[#allocation8 + $0x708] ss:$16 sps:$4 sm:$0xff]  }
 0x1c6   :  { %2389 = vmatpush1.bf16.msra.mxu0 %v3702_v11  ;;  %2561 = vmatpush1.bf16.msra.mxu1 %v3705_v12  ;;  %v3794_v11 = vld [vmem:[#allocation8 + $0x724] ss:$16 sps:$4 sm:$0xff]   ;;  %v3797_v12 = vld [vmem:[#allocation8 + $0x72c] ss:$16 sps:$4 sm:$0xff]  }
 0x1c7   :  { %2390 = vmatprep.subr.bf16.mxu0 %v3710_v14  ;;  %2562 = vmatprep.subr.bf16.mxu1 %v3713_v16  ;;  %v3792_v14 = vld [vmem:[#allocation8 + $0x720] ss:$16 sps:$4 sm:$0xff]   ;;  %v3795_v16 = vld [vmem:[#allocation8 + $0x728] ss:$16 sps:$4 sm:$0xff]  }
 0x1ca   :  { %2391 = vmatpush1.bf16.msra.mxu0 %v3708_v17  ;;  %2563 = vmatpush1.bf16.msra.mxu1 %v3711_v18  ;;  %v3800_v17 = vld [vmem:[#allocation8 + $0x744] ss:$16 sps:$4 sm:$0xff]   ;;  %v3803_v18 = vld [vmem:[#allocation8 + $0x74c] ss:$16 sps:$4 sm:$0xff]  }
 0x1cb   :  { %2392 = vmatprep.subr.bf16.mxu0 %v3716_v19  ;;  %2564 = vmatprep.subr.bf16.mxu1 %v3719_v20  ;;  %v3798_v19 = vld [vmem:[#allocation8 + $0x740] ss:$16 sps:$4 sm:$0xff]   ;;  %v3801_v20 = vld [vmem:[#allocation8 + $0x748] ss:$16 sps:$4 sm:$0xff]  }
 0x1ce   :  { %2393 = vmatpush1.bf16.msra.mxu0 %v3714_v21  ;;  %2565 = vmatpush1.bf16.msra.mxu1 %v3717_v22  ;;  %v3806_v21 = vld [vmem:[#allocation8 + $0x764] ss:$16 sps:$4 sm:$0xff]   ;;  %v3809_v22 = vld [vmem:[#allocation8 + $0x76c] ss:$16 sps:$4 sm:$0xff]  }
 0x1cf   :  { %2394 = vmatprep.subr.bf16.mxu0 %v3722_v23  ;;  %2566 = vmatprep.subr.bf16.mxu1 %v3725_v5  ;;  %v3804_v23 = vld [vmem:[#allocation8 + $0x760] ss:$16 sps:$4 sm:$0xff]   ;;  %v3807_v5 = vld [vmem:[#allocation8 + $0x768] ss:$16 sps:$4 sm:$0xff]  }
 0x1d2   :  { %2395 = vmatpush1.bf16.msra.mxu0 %v3720_v24  ;;  %2567 = vmatpush1.bf16.msra.mxu1 %v3723_v25  ;;  %v3812_v24 = vld [vmem:[#allocation8 + $0x784] ss:$16 sps:$4 sm:$0xff]   ;;  %v3815_v25 = vld [vmem:[#allocation8 + $0x78c] ss:$16 sps:$4 sm:$0xff]  }
 0x1d3   :  { %2396 = vmatprep.subr.bf16.mxu0 %v3728_v26  ;;  %2568 = vmatprep.subr.bf16.mxu1 %v3731_v27  ;;  %v3810_v26 = vld [vmem:[#allocation8 + $0x780] ss:$16 sps:$4 sm:$0xff]   ;;  %v3813_v27 = vld [vmem:[#allocation8 + $0x788] ss:$16 sps:$4 sm:$0xff]  }
 0x1d6   :  { %2397 = vmatpush1.bf16.msra.mxu0 %v3726_v28  ;;  %2569 = vmatpush1.bf16.msra.mxu1 %v3729_v29  ;;  %v3818_v28 = vld [vmem:[#allocation8 + $0x7a4] ss:$16 sps:$4 sm:$0xff]   ;;  %v3821_v29 = vld [vmem:[#allocation8 + $0x7ac] ss:$16 sps:$4 sm:$0xff]  }
 0x1d7   :  { %2398 = vmatprep.subr.bf16.mxu0 %v3734_v30  ;;  %2570 = vmatprep.subr.bf16.mxu1 %v3737_v31  ;;  %v3816_v30 = vld [vmem:[#allocation8 + $0x7a0] ss:$16 sps:$4 sm:$0xff]   ;;  %v3819_v31 = vld [vmem:[#allocation8 + $0x7a8] ss:$16 sps:$4 sm:$0xff]  }
 0x1da   :  { %2399 = vmatpush1.bf16.msra.mxu0 %v3732_v32  ;;  %2571 = vmatpush1.bf16.msra.mxu1 %v3735_v33  ;;  %v3824_v32 = vld [vmem:[#allocation8 + $0x7c4] ss:$16 sps:$4 sm:$0xff]   ;;  %v3827_v33 = vld [vmem:[#allocation8 + $0x7cc] ss:$16 sps:$4 sm:$0xff]  }
 0x1db   :  { %2411 = vmatprep.subr.bf16.mxu0 %v3740_v34  ;;  %2583 = vmatprep.subr.bf16.mxu1 %v3743_v35  ;;  %v3822_v34 = vld [vmem:[#allocation8 + $0x7c0] ss:$16 sps:$4 sm:$0xff]   ;;  %v3825_v35 = vld [vmem:[#allocation8 + $0x7c8] ss:$16 sps:$4 sm:$0xff]  }
 0x1dd   :  { %2401 = vmatmul.mubr.bf16.vlgmr.msra.gmra.mrb[8].mxu0 %v4167_v39  ;;  %2573 = vmatmul.mubr.bf16.vlgmr.msra.gmra.mrb[8].mxu1 %v4167_v39  ;;  %v3761_v39 = vld [vmem:[#allocation8 + $0x66c] ss:$16 sps:$4 sm:$0xff]  }
 0x1de   :  { %2412 = vmatpush1.bf16.msra.mxu0 %v3738_v36  ;;  %2584 = vmatpush1.bf16.msra.mxu1 %v3741_v37  ;;  %v3830_v36 = vld [vmem:[#allocation8 + $0x7e4] ss:$16 sps:$4 sm:$0xff]   ;;  %v3833_v37 = vld [vmem:[#allocation8 + $0x7ec] ss:$16 sps:$4 sm:$0xff]  }
 0x1df   :  { %2413 = vmatprep.subr.bf16.mxu0 %v3746_v38  ;;  %2585 = vmatprep.subr.bf16.mxu1 %v3749_v49  ;;  %v3828_v38 = vld [vmem:[#allocation8 + $0x7e0] ss:$16 sps:$4 sm:$0xff]   ;;  %v3831_v49 = vld [vmem:[#allocation8 + $0x7e8] ss:$16 sps:$4 sm:$0xff]  }
 0x1e0   :  { %2443 = vmatprep.mubr.bf16.mxu0 %v4173_v60  ;;  %2615 = vmatprep.mubr.bf16.mxu1 %v4173_v60  ;;  %v3765_v60 = vld [vmem:[#allocation8 + $0x688] ss:$16 sps:$4 sm:$0xff]  }
 0x1e2   :  { %2414 = vmatpush1.bf16.msra.mxu0 %v3744_v40  ;;  %2586 = vmatpush1.bf16.msra.mxu1 %v3747_v41  ;;  %v3834_v40 = vld [vmem:[#allocation10 + $0x40] sm:$0xff]  }
 0x1e3   :  { %2415 = vmatprep.subr.bf16.mxu0 %v3752_v0  ;;  %2587 = vmatprep.subr.bf16.mxu1 %v3755_v42  ;;  %v3835_v41 = vld [vmem:[#allocation10 + $0xc0] sm:$0xff]  }
 0x1e4   :  { %v3836_v0 = vld [vmem:[#allocation10] sm:$0xff]  }
 0x1e5   :  { %v3837_v42 = vld [vmem:[#allocation10 + $0x80] sm:$0xff]  }
 0x1e6   :  { %2416 = vmatpush1.bf16.msra.mxu0 %v3750_v44  ;;  %2588 = vmatpush1.bf16.msra.mxu1 %v3753_v43  ;;  %v3838_v44 = vld [vmem:[#allocation10 + $0x48] sm:$0xff]  }
 0x1e7   :  { %2417 = vmatprep.subr.bf16.mxu0 %v3758_v45  ;;  %2589 = vmatprep.subr.bf16.mxu1 %v3761_v39  ;;  %v3839_v43 = vld [vmem:[#allocation10 + $0xc8] sm:$0xff]  }
 0x1e8   :  { %v3840_v45 = vld [vmem:[#allocation10 + $0x8] sm:$0xff]  }
 0x1e9   :  { %v3841_v39 = vld [vmem:[#allocation10 + $0x88] sm:$0xff]  }
 0x1ea   :  { %2418 = vmatpush1.bf16.msra.mxu0 %v3756_v9  ;;  %2590 = vmatpush1.bf16.msra.mxu1 %v3759_v46  ;;  %v3842_v9 = vld [vmem:[#allocation10 + $0x50] sm:$0xff]  }
 0x1eb   :  { %2419 = vmatprep.subr.bf16.mxu0 %v3764_v47  ;;  %2591 = vmatprep.subr.bf16.mxu1 %v3767_v48  ;;  %v3843_v46 = vld [vmem:[#allocation10 + $0xd0] sm:$0xff]  }
 0x1ec   :  { %v3844_v47 = vld [vmem:[#allocation10 + $0x10] sm:$0xff]  }
 0x1ed   :  { %v3845_v48 = vld [vmem:[#allocation10 + $0x90] sm:$0xff]  }
 0x1ee   :  { %2420 = vmatpush1.bf16.msra.mxu0 %v3762_v50  ;;  %2592 = vmatpush1.bf16.msra.mxu1 %v3765_v60  ;;  %v3846_v50 = vld [vmem:[#allocation10 + $0x58] sm:$0xff]  }
 0x1ef   :  { %2421 = vmatprep.subr.bf16.mxu0 %v3770_v51  ;;  %2593 = vmatprep.subr.bf16.mxu1 %v3773_v52  ;;  %v3847_v60 = vld [vmem:[#allocation10 + $0xd8] sm:$0xff]   ;;  %v3850_v52 = vld [vmem:[#allocation10 + $0x60] sm:$0xff]  }
 0x1f0   :  { %v3848_v51 = vld [vmem:[#allocation10 + $0x18] sm:$0xff]  }
 0x1f2   :  { %2422 = vmatpush1.bf16.msra.mxu0 %v3768_v53  ;;  %2594 = vmatpush1.bf16.msra.mxu1 %v3771_v54  ;;  %v3851_v53 = vld [vmem:[#allocation10 + $0xe0] sm:$0xff]  }
 0x1f3   :  { %2423 = vmatprep.subr.bf16.mxu0 %v3776_v55  ;;  %2595 = vmatprep.subr.bf16.mxu1 %v3779_v56  ;;  %v3852_v54 = vld [vmem:[#allocation10 + $0x20] sm:$0xff]   ;;  %v3854_v56 = vld [vmem:[#allocation10 + $0x68] sm:$0xff]  }
 0x1f4   :  { %v3853_v55 = vld [vmem:[#allocation10 + $0xa0] sm:$0xff]  }
 0x1f6   :  { %2424 = vmatpush1.bf16.msra.mxu0 %v3774_v57  ;;  %2596 = vmatpush1.bf16.msra.mxu1 %v3777_v58  ;;  %v3855_v57 = vld [vmem:[#allocation10 + $0xe8] sm:$0xff]  }
 0x1f7   :  { %2425 = vmatprep.subr.bf16.mxu0 %v3782_v61  ;;  %2597 = vmatprep.subr.bf16.mxu1 %v3785_v62  ;;  %v3856_v58 = vld [vmem:[#allocation10 + $0x28] sm:$0xff]   ;;  %v3858_v62 = vld [vmem:[#allocation10 + $0x70] sm:$0xff]  }
 0x1f8   :  { %v3857_v61 = vld [vmem:[#allocation10 + $0xa8] sm:$0xff]  }
 0x1fa   :  { %2426 = vmatpush1.bf16.msra.mxu0 %v3780_v63  ;;  %2598 = vmatpush1.bf16.msra.mxu1 %v3783_v1  ;;  %v3859_v63 = vld [vmem:[#allocation10 + $0xf0] sm:$0xff]  }
 0x1fb   :  { %2427 = vmatprep.subr.bf16.mxu0 %v3788_v2  ;;  %2599 = vmatprep.subr.bf16.mxu1 %v3791_v3  ;;  %v3860_v1 = vld [vmem:[#allocation10 + $0x30] sm:$0xff]   ;;  %v3862_v3 = vld [vmem:[#allocation10 + $0x78] sm:$0xff]  }
 0x1fc   :  { %v3861_v2 = vld [vmem:[#allocation10 + $0xb0] sm:$0xff]  }
 0x1fe   :  { %2428 = vmatpush1.bf16.msra.mxu0 %v3786_v4  ;;  %2600 = vmatpush1.bf16.msra.mxu1 %v3789_v6  ;;  %v3863_v4 = vld [vmem:[#allocation10 + $0xf8] sm:$0xff]  }
 0x1ff   :  { %2429 = vmatprep.subr.bf16.mxu0 %v3794_v11  ;;  %2601 = vmatprep.subr.bf16.mxu1 %v3797_v12  ;;  %v3864_v6 = vld [vmem:[#allocation10 + $0x38] sm:$0xff]   ;;  %v980_v12 = vld [vmem:[%s4215_s4] sm:$0xf] }
 0x200   :  { %v3865_v11 = vld [vmem:[#allocation10 + $0xb8] sm:$0xff]  }
 0x202   :  { %2430 = vmatpush1.bf16.msra.mxu0 %v3792_v14  ;;  %2602 = vmatpush1.bf16.msra.mxu1 %v3795_v16  ;;  %v985_v14 = vrot.slane %v980_v12, %v164_v8  ;;  %v993_v16 = vrot.slane %v980_v12, %v172_v13 }
 0x203   :  { %2431 = vmatprep.subr.bf16.mxu0 %v3800_v17  ;;  %2603 = vmatprep.subr.bf16.mxu1 %v3803_v18  ;;  %v989_v17 = vrot.slane %v980_v12, %v168_v10  ;;  %v997_v18 = vrot.slane %v980_v12, %v176_v15 }
 0x206   :  { %2432 = vmatpush1.bf16.msra.mxu0 %v3798_v19  ;;  %2604 = vmatpush1.bf16.msra.mxu1 %v3801_v20 }
 0x207   :  { %2433 = vmatprep.subr.bf16.mxu0 %v3806_v21  ;;  %2605 = vmatprep.subr.bf16.mxu1 %v3809_v22 }
 0x20a   :  { %2434 = vmatpush1.bf16.msra.mxu0 %v3804_v23  ;;  %2606 = vmatpush1.bf16.msra.mxu1 %v3807_v5 }
 0x20b   :  { %2435 = vmatprep.subr.bf16.mxu0 %v3812_v24  ;;  %2607 = vmatprep.subr.bf16.mxu1 %v3815_v25 }
 0x20e   :  { %2436 = vmatpush1.bf16.msra.mxu0 %v3810_v26  ;;  %2608 = vmatpush1.bf16.msra.mxu1 %v3813_v27 }
 0x20f   :  { %2437 = vmatprep.subr.bf16.mxu0 %v3818_v28  ;;  %2609 = vmatprep.subr.bf16.mxu1 %v3821_v29 }
 0x212   :  { %2438 = vmatpush1.bf16.msra.mxu0 %v3816_v30  ;;  %2610 = vmatpush1.bf16.msra.mxu1 %v3819_v31 }
 0x213   :  { %2439 = vmatprep.subr.bf16.mxu0 %v3824_v32  ;;  %2611 = vmatprep.subr.bf16.mxu1 %v3827_v33 }
 0x216   :  { %2440 = vmatpush1.bf16.msra.mxu0 %v3822_v34  ;;  %2612 = vmatpush1.bf16.msra.mxu1 %v3825_v35 }
 0x217   :  { %2441 = vmatprep.subr.bf16.mxu0 %v3830_v36  ;;  %2613 = vmatprep.subr.bf16.mxu1 %v3833_v37 }
 0x21a   :  { %2442 = vmatpush1.bf16.msra.mxu0 %v3828_v38  ;;  %2614 = vmatpush1.bf16.msra.mxu1 %v3831_v49 }
 0x21b   :  { %3358 = vmatprep.subr.bf16.mxu0 %v3834_v40  ;;  %3380 = vmatprep.subr.bf16.mxu1 %v3835_v41 }
 0x21d   :  { %2444 = vmatmul.mubr.bf16.vlgmr.msra.gmra.mrb[8].mxu0 %v4171_v59  ;;  %2616 = vmatmul.mubr.bf16.vlgmr.msra.gmra.mrb[8].mxu1 %v4171_v59  ;;  %v3849_v59 = vld [vmem:[#allocation10 + $0x98] sm:$0xff]  }
 0x21e   :  { %3359 = vmatpush3.bf16.msra.mxu0 %v3836_v0  ;;  %3381 = vmatpush3.bf16.msra.mxu1 %v3837_v42  ;;  %v3325_v42 = vld [vmem:[%s4217_s6] ss:$0 sm:$0xff]  ;;  %s3976_s6 = scalar_lea.vmem %s2991_s18, 256 }
 0x21f   :  { %3360 = vmatprep.subr.bf16.mxu0 %v3838_v44  ;;  %3382 = vmatprep.subr.bf16.mxu1 %v3839_v43  ;;  %p3977_p12 = scmp.ne.s32.totalorder %s2991_s18, %s3976_s6  ;;  %p3982_p0 = scmp.lt.s32.totalorder %s3976_s6, %s3976_s6 }
 0x221   :  { %p3983_p1 = por %p3982_p0, %p3981_p13 }
 0x222   :  { %3361 = vmatpush3.bf16.msra.mxu0 %v3840_v45  ;;  %3383 = vmatpush3.bf16.msra.mxu1 %v3841_v39 }
 0x223   :  { %3362 = vmatprep.subr.bf16.mxu0 %v3842_v9  ;;  %3384 = vmatprep.subr.bf16.mxu1 %v3843_v46  ;;  %p3984_p2 = pnand %p3983_p1, %p3977_p12 }
 0x226   :  { %3363 = vmatpush3.bf16.msra.mxu0 %v3844_v47  ;;  %3385 = vmatpush3.bf16.msra.mxu1 %v3845_v48 }
 0x227   :  { %3364 = vmatprep.subr.bf16.mxu0 %v3846_v50  ;;  %3386 = vmatprep.subr.bf16.mxu1 %v3847_v60 }
 0x22a   :  { %3365 = vmatpush3.bf16.msra.mxu0 %v3848_v51  ;;  %3387 = vmatpush3.bf16.msra.mxu1 %v3849_v59 }
 0x22b   :  { %3366 = vmatprep.subr.bf16.mxu0 %v3850_v52  ;;  %3388 = vmatprep.subr.bf16.mxu1 %v3851_v53 }
 0x22e   :  { %3367 = vmatpush3.bf16.msra.mxu0 %v3852_v54  ;;  %3389 = vmatpush3.bf16.msra.mxu1 %v3853_v55 }
 0x22f   :  { %3368 = vmatprep.subr.bf16.mxu0 %v3854_v56  ;;  %3390 = vmatprep.subr.bf16.mxu1 %v3855_v57 }
 0x232   :  { %3369 = vmatpush3.bf16.msra.mxu0 %v3856_v58  ;;  %3391 = vmatpush3.bf16.msra.mxu1 %v3857_v61 }
 0x233   :  { %3370 = vmatprep.subr.bf16.mxu0 %v3858_v62  ;;  %3392 = vmatprep.subr.bf16.mxu1 %v3859_v63 }
 0x236   :  { %3371 = vmatpush3.bf16.msra.mxu0 %v3860_v1  ;;  %3393 = vmatpush3.bf16.msra.mxu1 %v3861_v2 }
 0x237   :  { %3372 = vmatprep.subr.bf16.mxu0 %v3862_v3  ;;  %3394 = vmatprep.subr.bf16.mxu1 %v3863_v4 }
 0x23a   :  { %3373 = vmatpush3.bf16.msra.mxu0 %v3864_v6  ;;  %3395 = vmatpush3.bf16.msra.mxu1 %v3865_v11 }
 0x2f0   :  { %v2445_v19 = vpop.f32.mrb[8].mxu0  ;;  %v2617_v20 = vpop.f32.mrb[8].mxu1 }
 0x2f1   :  { %v3402_v21 = vadd.f32 %v2445_v19, %v985_v14  ;;  %v3406_v22 = vadd.f32 %v2617_v20, %v993_v16  ;;  %v2447_v23 = vpop.f32.mrb[9].mxu0  ;;  %v2619_v5 = vpop.f32.mrb[9].mxu1 }
 0x2f2   :  { %v3403_v24 = vadd.f32 %v2447_v23, %v989_v17  ;;  %v3407_v25 = vadd.f32 %v2619_v5, %v997_v18  ;;  %v2449_v26 = vpop.f32.mrb[10].mxu0  ;;  %v2621_v27 = vpop.f32.mrb[10].mxu1 }
 0x2f3   :  { %v3404_v8 = vadd.f32 %v2449_v26, %v985_v14  ;;  %v3408_v28 = vadd.f32 %v2621_v27, %v993_v16  ;;  %v2451_v29 = vpop.f32.mrb[11].mxu0  ;;  %v2623_v13 = vpop.f32.mrb[11].mxu1  ;;  %v2626_v10 = vmax.f32 %v3402_v21, 0.0  ;;  %v2628_v32 = vmax.f32 %v3406_v22, 0.0 }
 0x2f4   :  { %v3405_v30 = vadd.f32 %v2451_v29, %v989_v17  ;;  %v3409_v31 = vadd.f32 %v2623_v13, %v997_v18  ;;  %v2627_v33 = vmax.f32 %v3403_v24, 0.0  ;;  %v2629_v34 = vmax.f32 %v3407_v25, 0.0 }
 0x2f5   :  { %v2630_v7 = vmax.f32 %v3404_v8, 0.0  ;;  %v2632_v15 = vmax.f32 %v3408_v28, 0.0 }
 0x2f6   :  { %v2631_v35 = vmax.f32 %v3405_v30, 0.0  ;;  %v2633_v36 = vmax.f32 %v3409_v31, 0.0 }
 0x2f7   :  { %v2634_v37 = vpack.c.bf16 %v2630_v7, %v2626_v10  ;;  %v2636_v38 = vpack.c.bf16 %v2632_v15, %v2628_v32 }
 0x2f8   :  { %v2635_v49 = vpack.c.bf16 %v2631_v35, %v2627_v33  ;;  %v2637_v40 = vpack.c.bf16 %v2633_v36, %v2629_v34 }
 0x2fa   :  { %2933 = vmatprep.mubr.bf16.mxu0 %v2635_v49  ;;  %2974 = vmatprep.mubr.bf16.mxu1 %v2637_v40 }
 0x2fb   :  { %2934 = vmatmul.mubr.bf16.vlgmr.msra.gmra.mrb[12].mxu0 %v2634_v37  ;;  %2975 = vmatmul.mubr.bf16.vlgmr.msra.gmra.mrb[12].mxu1 %v2636_v38 }
 0x3ce   :  { %v3374_v41 = vpop.f32.mrb[12].mxu0  ;;  %v3396_v0 = vpop.f32.mrb[12].mxu1 }
 0x3cf   :  { %v3375_v44 = vpop.f32.mrb[13].mxu0  ;;  %v3397_v43 = vpop.f32.mrb[13].mxu1 }
 0x3d0   :  { %v3376_v45 = vadd.f32 %v3375_v44, %v3374_v41  ;;  %v3398_v39 = vadd.f32 %v3397_v43, %v3396_v0  ;;  %v3377_v9 = vpop.f32.mrb[14].mxu0  ;;  %v3399_v46 = vpop.f32.mrb[14].mxu1 }
 0x3d1   :  { %v3378_v47 = vpop.f32.mrb[15].mxu0  ;;  %v3400_v48 = vpop.f32.mrb[15].mxu1 }
 0x3d2   :  { %v2936_v50 = vadd.f32 %v3376_v45, %v3325_v42  ;;  %v3379_v60 = vadd.f32 %v3378_v47, %v3377_v9  ;;  %v3401_v51 = vadd.f32 %v3400_v48, %v3399_v46 }
 0x3d4   :  { %v2977_v59 = vadd.f32 %v3398_v39, %v2936_v50  ;;  %v2939_v52 = vadd.f32 %v3379_v60, %v3325_v42 }
 0x3d6   :  { %2983 = vst [vmem:[#allocation11] sm:$0xff] %v2977_v59  ;;  %v2980_v53 = vadd.f32 %v3401_v51, %v2939_v52 }
 0x3d8   :  { %2984 = vst [vmem:[#allocation11 + $0x8] sm:$0xff] %v2980_v53 }
 0x3d9   :  { %3987 = shalt.err (!%p3984_p2)
}
 0x3da   :  { %s3988_s21 = scalar_lea.hbm %s4218_s7, 256 }
 0x3db   :  { %p3989_p3 = scmp.ne.s32.totalorder %s4218_s7, %s3988_s21  ;;  %p3992_p4 = scmp.lt.u32.totalorder %s3988_s21, %s4218_s7 }
 0x3dd   :  { %p3994_p5 = pnand %p3992_p4, %p3989_p3 }
 0x3df   :  { %3997 = shalt.err (!%p3994_p5)
}
 0x3e0   :  { %s4019_s25 = smov 128   ;;  %s4020_s26 = smov 8  }
 0x3e1   :  { %2996 = dma.vmem_to_hbm [thread:$0]  %s2991_s18, 256, %s4218_s7, [#allocation4], %s4019_s25, %s4019_s25, %s4020_s26  }
 0x3e2   :  { %4004 = dma.done.wait [#allocation4], 256  }
 0x3e3   :  { %4005 = vsyncadd [#allocation4], 4294967040 }
 0x3e4   :  { %3000 = vsyncpa [#allocation3], 1 }
 0x3e5   :  { %3001 = vsyncpa [#allocation6], 1 }
 0x3e6   :  { %3002 = vsyncpa [#allocation9], 1 }
 0x3e7   :  { %3003 = vsyncpa [#allocation4], 1 }

</bundles_post_ra>
